<compile_context>
chip_gen: v5e
topology: v5e:2x2
jax: 0.10.0
libtpu: 0.0.40
codegen_flags: <defaults>
</compile_context>

<pallas_src>
import math
from functools import partial

import jax
import jax.numpy as jnp
from jax.experimental import pallas as pl
from jax.experimental.pallas import tpu as pltpu

_BN_EPS = 1e-5


# ----------------------------------------------------------------------------
# Fused kernel: pool -> 1x1 conv (BN scale + 1/HW folded in) -> shift -> ReLU
#               -> spatial broadcast (nearest upsample of the 1x1 map)
# ----------------------------------------------------------------------------
def _aspp_pooling_kernel(x_ref, w_ref, t_ref, o_ref, acc_ref):
    """
    x_ref  : [B, Cin, thw_in]   spatial tile of the NCHW input (grid axis 1 = reduction)
    w_ref  : [Cin, Cout]        1x1 conv weight with BN scale and 1/(H*W) folded in
    t_ref  : [1, Cout]          folded BN shift
    o_ref  : [B, Cout, thw_out] broadcast output tile (grid axis 0 = parallel)
    acc_ref: [B, Cin]           VMEM running spatial-sum accumulator
    """
    k = pl.program_id(1)

    @pl.when(k == 0)
    def _():
        acc_ref[...] = jnp.zeros_like(acc_ref)

    # Partial spatial sum for this input tile (lane reduction on the XLU).
    acc_ref[...] += jnp.sum(x_ref[...], axis=-1)

    @pl.when(k == pl.num_programs(1) - 1)
    def _():
        # acc already holds the spatial sum; 1/(H*W) and BN scale live in w_ref.
        y = jnp.dot(acc_ref[...], w_ref[...], preferred_element_type=jnp.float32)
        y = jnp.maximum(y + t_ref[...], 0.0)                       # BN shift + ReLU
        # Nearest upsample of a 1x1 map == constant broadcast along the lane axis.
        o_ref[...] = jnp.broadcast_to(y[:, :, None], o_ref.shape).astype(o_ref.dtype)


# ----------------------------------------------------------------------------
# Tiling helper: largest multiple-of-128 divisor of `hw` whose [rows, tile] f32
# block fits a per-buffer VMEM byte budget; falls back to the full extent
# (always legal as a block dim) when hw is not a multiple of 128.
# ----------------------------------------------------------------------------
def _spatial_tile(hw, rows, budget_bytes=4 << 20):
    if hw % 128 != 0:
        return hw  # full-extent block is the only legal option
    cap = max(128, (budget_bytes // (rows * 4)) // 128 * 128)
    t = min(hw, cap)
    while t >= 128:
        if hw % t == 0:
            return t
        t -= 128
    return hw


# ----------------------------------------------------------------------------
# Wrapper
# ----------------------------------------------------------------------------
def aspp_pooling(x_nchw, w, gamma, beta, mean, var, eps=_BN_EPS):
    """Forward pass of ASPPPooling.  x_nchw: [B, Cin, H, W] -> [B, Cout, H, H].

    Matches the PyTorch module: the pooled map is 1x1, scale_factor = H // 1,
    so the output spatial size is (H, H) regardless of W.
    """
    B, Cin, H, W = x_nchw.shape
    Cout = w.shape[1]
    HW = H * W
    Hout = Wout = H            # scale_factor = int(size[0]) // int(pooled.shape[-1]) = H
    HW_out = Hout * Wout

    # Free, contiguous reshape — stays in NCHW layout (no transpose, no HBM copy).
    x3 = x_nchw.reshape(B, Cin, HW)

    # Fold BatchNorm (inference) and the 1/(H*W) mean into the conv weight.
    scale = gamma / jnp.sqrt(var + eps)
    shift = beta - mean * scale
    w_eff = (w * (scale * (1.0 / HW))[None, :]).astype(jnp.float32)

    thw_in = _spatial_tile(HW, B * Cin)
    thw_out = _spatial_tile(HW_out, B * Cout)
    grid = (HW_out // thw_out, HW // thw_in)

    out3 = pl.pallas_call(
        _aspp_pooling_kernel,
        out_shape=jax.ShapeDtypeStruct((B, Cout, HW_out), jnp.float32),
        grid=grid,
        in_specs=[
            pl.BlockSpec((B, Cin, thw_in), lambda i, k: (0, 0, k)),
            pl.BlockSpec((Cin, Cout), lambda i, k: (0, 0)),
            pl.BlockSpec((1, Cout), lambda i, k: (0, 0)),
        ],
        out_specs=pl.BlockSpec((B, Cout, thw_out), lambda i, k: (0, 0, i)),
        scratch_shapes=[pltpu.VMEM((B, Cin), jnp.float32)],
        compiler_params=pltpu.CompilerParams(
            dimension_semantics=("parallel", "arbitrary")),
    )(x3, w_eff, shift.reshape(1, Cout).astype(jnp.float32))

    # Free reshape back to NCHW 4-D.
    return out3.reshape(B, Cout, Hout, Wout)


# ----------------------------------------------------------------------------
# Pure-JAX reference (for correctness check)
# ----------------------------------------------------------------------------
def aspp_pooling_ref(x_nchw, w, gamma, beta, mean, var, eps=_BN_EPS):
    B, Cin, H, W = x_nchw.shape
    Cout = w.shape[1]
    pooled = jnp.mean(x_nchw, axis=(2, 3))                       # [B, Cin]
    y = pooled @ w                                               # [B, Cout]
    y = (y - mean) / jnp.sqrt(var + eps) * gamma + beta          # BatchNorm (eval)
    y = jnp.maximum(y, 0.0)                                      # ReLU
    sf = H // 1                                                  # int(size[0]) // 1
    return jnp.broadcast_to(y[:, :, None, None], (B, Cout, sf, sf))


# ----------------------------------------------------------------------------
if __name__ == "__main__":
    key = jax.random.PRNGKey(0)
    k1, k2, k3, k4, k5, k6 = jax.random.split(key, 6)

    # Small shapes consistent with how the module is used
    # (ASPPPooling(in_channels=160, out_channels=...)): B=2, Cin=160, Cout=128, 16x16.
    B, Cin, Cout, H, W = 2, 160, 128, 16, 16

    x = jax.random.normal(k1, (B, Cin, H, W), jnp.float32)
    w = jax.random.normal(k2, (Cin, Cout), jnp.float32) * (1.0 / math.sqrt(Cin))
    gamma = 1.0 + 0.1 * jax.random.normal(k3, (Cout,), jnp.float32)
    beta = 0.1 * jax.random.normal(k4, (Cout,), jnp.float32)
    mean = 0.05 * jax.random.normal(k5, (Cout,), jnp.float32)
    var = 1.0 + 0.1 * jnp.abs(jax.random.normal(k6, (Cout,), jnp.float32))

    fwd = jax.jit(aspp_pooling)
    out = fwd(x, w, gamma, beta, mean, var)
    out = jax.block_until_ready(out)

    ref = aspp_pooling_ref(x, w, gamma, beta, mean, var)

    assert out.shape == (B, Cout, H, H), out.shape
    assert jnp.allclose(out, ref, rtol=1e-3, atol=1e-3), float(jnp.max(jnp.abs(out - ref)))
    print("KERNEL_OK")
</pallas_src>

<mosaic_0001>
module attributes {stable_mosaic.version = 11 : i64} {
  func.func @_aspp_pooling_kernel(%arg0: i32, %arg1: i32, %arg2: memref<2x160x256xf32, #tpu.memory_space<vmem>>, %arg3: memref<160x128xf32, #tpu.memory_space<vmem>>, %arg4: memref<1x128xf32, #tpu.memory_space<vmem>>, %arg5: memref<2x128x256xf32, #tpu.memory_space<vmem>>, %arg6: memref<2x160xf32, #tpu.memory_space<vmem>>) attributes {dimension_semantics = [#tpu.dimension_semantics<parallel>, #tpu.dimension_semantics<arbitrary>], iteration_bounds = array<i64: 1, 1>, scalar_prefetch = 0 : i64, scratch_operands = 1 : i64, tpu.core_type = #tpu.core_type<tc>, window_params = [{transform_indices = @transform_0, window_bounds = array<i64: 2, 160, 256>}, {pipeline_mode = #tpu.pipeline_mode<synchronous>, transform_indices = @transform_1, window_bounds = array<i64: 160, 128>}, {pipeline_mode = #tpu.pipeline_mode<synchronous>, transform_indices = @transform_2, window_bounds = array<i64: 1, 128>}, {transform_indices = @transform_3, window_bounds = array<i64: 2, 128, 256>}]} {
    %c0_i32 = arith.constant 0 : i32
    %0 = arith.cmpi eq, %arg1, %c0_i32 : i32
    %1 = arith.extui %0 : i1 to i32
    %c0_i32_0 = arith.constant 0 : i32
    %2 = arith.cmpi ne, %1, %c0_i32_0 : i32
    scf.if %2 {
      %cst_9 = arith.constant 0.000000e+00 : f32
      %11 = vector.broadcast %cst_9 : f32 to vector<2x160xf32>
      %c0_10 = arith.constant 0 : index
      %c0_11 = arith.constant 0 : index
      %12 = vector.load %arg6[%c0_10, %c0_11] : memref<2x160xf32, #tpu.memory_space<vmem>>, vector<2x160xf32>
      tpu.vector_store %arg6[%c0_10, %c0_11], %11 {strides = array<i32>} : memref<2x160xf32, #tpu.memory_space<vmem>>, vector<2x160xf32>,
    } else {
    }
    %c0 = arith.constant 0 : index
    %c0_1 = arith.constant 0 : index
    %3 = vector.load %arg6[%c0, %c0_1] : memref<2x160xf32, #tpu.memory_space<vmem>>, vector<2x160xf32>
    %c0_2 = arith.constant 0 : index
    %c0_3 = arith.constant 0 : index
    %c0_4 = arith.constant 0 : index
    %4 = vector.load %arg2[%c0_2, %c0_3, %c0_4] : memref<2x160x256xf32, #tpu.memory_space<vmem>>, vector<2x160x256xf32>
    %cst = arith.constant dense<0.000000e+00> : vector<2x160xf32>
    %5 = vector.multi_reduction <add>, %4, %cst [2] : vector<2x160x256xf32> to vector<2x160xf32>
    %6 = arith.addf %3, %5 : vector<2x160xf32>
    %c0_5 = arith.constant 0 : index
    %c0_6 = arith.constant 0 : index
    %7 = vector.load %arg6[%c0_5, %c0_6] : memref<2x160xf32, #tpu.memory_space<vmem>>, vector<2x160xf32>
    tpu.vector_store %arg6[%c0_5, %c0_6], %6 {strides = array<i32>} : memref<2x160xf32, #tpu.memory_space<vmem>>, vector<2x160xf32>,
    %c0_i32_7 = arith.constant 0 : i32
    %8 = arith.cmpi eq, %arg1, %c0_i32_7 : i32
    %9 = arith.extui %8 : i1 to i32
    %c0_i32_8 = arith.constant 0 : i32
    %10 = arith.cmpi ne, %9, %c0_i32_8 : i32
    scf.if %10 {
      %c0_9 = arith.constant 0 : index
      %c0_10 = arith.constant 0 : index
      %11 = vector.load %arg6[%c0_9, %c0_10] : memref<2x160xf32, #tpu.memory_space<vmem>>, vector<2x160xf32>
      %c0_11 = arith.constant 0 : index
      %c0_12 = arith.constant 0 : index
      %12 = vector.load %arg3[%c0_11, %c0_12] : memref<160x128xf32, #tpu.memory_space<vmem>>, vector<160x128xf32>
      %cst_13 = arith.constant dense<0.000000e+00> : vector<2x128xf32>
      %13 = tpu.matmul %11, %12, %cst_13 {dimension_numbers = #tpu.dot_dimension_numbers<[1], [0], [0], [1], [0, 0, 1, 1], [], []>} : vector<2x160xf32>, vector<160x128xf32>, vector<2x128xf32> -> vector<2x128xf32>
      %c0_14 = arith.constant 0 : index
      %c0_15 = arith.constant 0 : index
      %14 = vector.load %arg4[%c0_14, %c0_15] : memref<1x128xf32, #tpu.memory_space<vmem>>, vector<1x128xf32>
      %15 = vector.broadcast %14 : vector<1x128xf32> to vector<2x128xf32>
      %16 = arith.addf %13, %15 : vector<2x128xf32>
      %cst_16 = arith.constant 0.000000e+00 : f32
      %17 = vector.broadcast %cst_16 : f32 to vector<2x128xf32>
      %18 = arith.maximumf %16, %17 : vector<2x128xf32>
      %19 = vector.shape_cast %18 : vector<2x128xf32> to vector<2x128x1xf32>
      %20 = vector.shape_cast %19 : vector<2x128x1xf32> to vector<2x128x1xf32>
      %21 = vector.broadcast %20 : vector<2x128x1xf32> to vector<2x128x256xf32>
      %c0_17 = arith.constant 0 : index
      %c0_18 = arith.constant 0 : index
      %c0_19 = arith.constant 0 : index
      %22 = vector.load %arg5[%c0_17, %c0_18, %c0_19] : memref<2x128x256xf32, #tpu.memory_space<vmem>>, vector<2x128x256xf32>
      tpu.vector_store %arg5[%c0_17, %c0_18, %c0_19], %21 {strides = array<i32>} : memref<2x128x256xf32, #tpu.memory_space<vmem>>, vector<2x128x256xf32>,
    } else {
    }
    return
  }
  func.func @transform_0(%arg0: i32, %arg1: i32) -> (i32, i32, i32) {
    %c0_i32 = arith.constant 0 : i32
    %c0_i32_0 = arith.constant 0 : i32
    %c0_i32_1 = arith.constant 0 : i32
    return %c0_i32, %c0_i32_0, %arg1 : i32, i32, i32
  }
  func.func @transform_1(%arg0: i32, %arg1: i32) -> (i32, i32) {
    %c0_i32 = arith.constant 0 : i32
    %c0_i32_0 = arith.constant 0 : i32
    %c0_i32_1 = arith.constant 0 : i32
    return %c0_i32, %c0_i32_0 : i32, i32
  }
  func.func @transform_2(%arg0: i32, %arg1: i32) -> (i32, i32) {
    %c0_i32 = arith.constant 0 : i32
    %c0_i32_0 = arith.constant 0 : i32
    %c0_i32_1 = arith.constant 0 : i32
    return %c0_i32, %c0_i32_0 : i32, i32
  }
  func.func @transform_3(%arg0: i32, %arg1: i32) -> (i32, i32, i32) {
    %c0_i32 = arith.constant 0 : i32
    %c0_i32_0 = arith.constant 0 : i32
    %c0_i32_1 = arith.constant 0 : i32
    return %c0_i32, %c0_i32_0, %arg0 : i32, i32, i32
  }
}

</mosaic_0001>

<bundles_post_ra>
// kernel: aspp_pooling.1
= control target key start
LH: loop header
LB: loop body
LE: loop exit
PB: predicated region body
PF: predicated region fallthrough
CT: control target
= control target key end

     0   :  { %vm1235_vm0 = vcmask 130112   ;;  %vm1239_vm1 = vcmask 195712   ;;  %vm1243_vm2 = vcmask 261312   ;;  %vm1247_vm3 = vcmask 326912   ;;  %s2803_s0 = inlined_call_operand.vmem [shape: f32[2,160,256], index: 0, kind: input, shape index: {}]   ;;  %s2804_s2 = inlined_call_operand.vmem [shape: f32[1,128], index: 2, kind: input, shape index: {}]   ;;  %s2805_s1 = inlined_call_operand.vmem [shape: f32[160,128], index: 1, kind: input, shape index: {}]   ;;  %s2806_s3 = inlined_call_operand.vmem [shape: f32[2,128,256], index: 3, kind: output, shape index: {}]  }
   0x1   :  { %v23_v0 = vld [vmem:[%s2803_s0] sm:$0xff]  ;;  %v24_v1 = vld [vmem:[%s2803_s0 + $0x8] sm:$0xff]  ;;  %v25_v9 = vld [vmem:[%s2803_s0 + $0x10] sm:$0xff]  ;;  %vm1251_vm4 = vcmask 392512   ;;  %vm1255_vm5 = vcmask 458112   ;;  %vm1259_vm6 = vcmask 523712  }
   0x2   :  { %v31_v2 = vld [vmem:[%s2803_s0 + $0x40] sm:$0xff]  ;;  %v103_v3 = vadd.f32 %v24_v1, %v23_v0  ;;  %v32_v4 = vld [vmem:[%s2803_s0 + $0x48] sm:$0xff]  ;;  %v26_v10 = vld [vmem:[%s2803_s0 + $0x18] sm:$0xff]  ;;  %vm1263_vm7 = vcmask 589312   ;;  %vm1267_vm8 = vcmask 654912   ;;  %vm1271_vm9 = vcmask 720512  }
   0x3   :  { %v27_v5 = vld [vmem:[%s2803_s0 + $0x20] sm:$0xff]  ;;  %v28_v6 = vld [vmem:[%s2803_s0 + $0x28] sm:$0xff]  ;;  %v115_v7 = vadd.f32 %v32_v4, %v31_v2  ;;  %v33_v11 = vld [vmem:[%s2803_s0 + $0x50] sm:$0xff]  ;;  %v106_v15 = vadd.f32 %v26_v10, %v25_v9  ;;  %vm1275_vm10 = vcmask 786112   ;;  %vm1279_vm11 = vcmask 851712  }
   0x4   :  { %v109_v8 = vadd.f32 %v28_v6, %v27_v5  ;;  %104 = vadd.xlane.f32.xlu0 %v103_v3  ;;  %v34_v12 = vld [vmem:[%s2803_s0 + $0x58] sm:$0xff]  ;;  %v29_v13 = vld [vmem:[%s2803_s0 + $0x30] sm:$0xff]  ;;  %v39_v18 = vld [vmem:[%s2803_s0 + $0x80] sm:$0xff]  ;;  %vm1283_vm12 = vcmask 917312   ;;  %vm2808_vm13 = vcmask 982912   ;;  %vm2807_vm14 = vcmask 1048512  }
   0x5   :  { %116 = vadd.xlane.f32.xlu2 %v115_v7  ;;  %v30_v14 = vld [vmem:[%s2803_s0 + $0x38] sm:$0xff]  ;;  %v118_v16 = vadd.f32 %v34_v12, %v33_v11  ;;  %v35_v19 = vld [vmem:[%s2803_s0 + $0x60] sm:$0xff]  ;;  %v36_v20 = vld [vmem:[%s2803_s0 + $0x68] sm:$0xff]  ;;  %vm18_vm15 = vcmask 1041408  }
   0x6   :  { %110 = vadd.xlane.f32.xlu1 %v109_v8  ;;  %v112_v17 = vadd.f32 %v30_v14, %v29_v13  ;;  %v40_v21 = vld [vmem:[%s2803_s0 + $0x88] sm:$0xff]  ;;  %v37_v22 = vld [vmem:[%s2803_s0 + $0x70] sm:$0xff]  ;;  %v38_v23 = vld [vmem:[%s2803_s0 + $0x78] sm:$0xff]  ;;  %v121_v24 = vadd.f32 %v36_v20, %v35_v19 }
   0x7   :  { %v127_v25 = vadd.f32 %v40_v21, %v39_v18  ;;  %v124_v26 = vadd.f32 %v38_v23, %v37_v22  ;;  %v45_v27 = vld [vmem:[%s2803_s0 + $0xb0] sm:$0xff]  ;;  %v42_v29 = vld [vmem:[%s2803_s0 + $0x98] sm:$0xff]  ;;  %v43_v31 = vld [vmem:[%s2803_s0 + $0xa0] sm:$0xff] }
   0x8   :  { %v41_v28 = vld [vmem:[%s2803_s0 + $0x90] sm:$0xff]  ;;  %v46_v30 = vld [vmem:[%s2803_s0 + $0xb8] sm:$0xff]  ;;  %v44_v32 = vld [vmem:[%s2803_s0 + $0xa8] sm:$0xff] }
   0x9   :  { %v130_v33 = vadd.f32 %v42_v29, %v41_v28  ;;  %v136_v34 = vadd.f32 %v46_v30, %v45_v27  ;;  %v133_v35 = vadd.f32 %v44_v32, %v43_v31  ;;  %v51_v36 = vld [vmem:[%s2803_s0 + $0xe0] sm:$0xff]  ;;  %v48_v38 = vld [vmem:[%s2803_s0 + $0xc8] sm:$0xff]  ;;  %v49_v40 = vld [vmem:[%s2803_s0 + $0xd0] sm:$0xff] }
   0xa   :  { %v47_v37 = vld [vmem:[%s2803_s0 + $0xc0] sm:$0xff]  ;;  %v52_v39 = vld [vmem:[%s2803_s0 + $0xe8] sm:$0xff]  ;;  %v50_v41 = vld [vmem:[%s2803_s0 + $0xd8] sm:$0xff] }
   0xb   :  { %v139_v42 = vadd.f32 %v48_v38, %v47_v37  ;;  %v145_v43 = vadd.f32 %v52_v39, %v51_v36  ;;  %v142_v44 = vadd.f32 %v50_v41, %v49_v40  ;;  %v57_v45 = vld [vmem:[%s2803_s0 + $0x110] sm:$0xff]  ;;  %v54_v47 = vld [vmem:[%s2803_s0 + $0xf8] sm:$0xff]  ;;  %v55_v49 = vld [vmem:[%s2803_s0 + $0x100] sm:$0xff] }
   0xc   :  { %107 = vadd.xlane.f32.xlu0 %v106_v15  ;;  %v53_v46 = vld [vmem:[%s2803_s0 + $0xf0] sm:$0xff]  ;;  %v58_v48 = vld [vmem:[%s2803_s0 + $0x118] sm:$0xff]  ;;  %v56_v50 = vld [vmem:[%s2803_s0 + $0x108] sm:$0xff] }
   0xd   :  { %119 = vadd.xlane.f32.xlu2 %v118_v16  ;;  %v148_v51 = vadd.f32 %v54_v47, %v53_v46  ;;  %v154_v52 = vadd.f32 %v58_v48, %v57_v45  ;;  %v151_v53 = vadd.f32 %v56_v50, %v55_v49  ;;  %v63_v54 = vld [vmem:[%s2803_s0 + $0x140] sm:$0xff]  ;;  %v60_v56 = vld [vmem:[%s2803_s0 + $0x128] sm:$0xff]  ;;  %v61_v58 = vld [vmem:[%s2803_s0 + $0x130] sm:$0xff] }
   0xe   :  { %113 = vadd.xlane.f32.xlu1 %v112_v17  ;;  %v59_v55 = vld [vmem:[%s2803_s0 + $0x120] sm:$0xff]  ;;  %v64_v57 = vld [vmem:[%s2803_s0 + $0x148] sm:$0xff]  ;;  %v62_v59 = vld [vmem:[%s2803_s0 + $0x138] sm:$0xff] }
   0xf   :  { %v157_v60 = vadd.f32 %v60_v56, %v59_v55  ;;  %v163_v61 = vadd.f32 %v64_v57, %v63_v54  ;;  %v160_v62 = vadd.f32 %v62_v59, %v61_v58  ;;  %v69_v63 = vld [vmem:[%s2803_s0 + $0x170] sm:$0xff]  ;;  %v66_v1 = vld [vmem:[%s2803_s0 + $0x158] sm:$0xff]  ;;  %v67_v3 = vld [vmem:[%s2803_s0 + $0x160] sm:$0xff]  ;;  %v1732_v56 = vmov 0  }
  0x10   :  { %v65_v0 = vld [vmem:[%s2803_s0 + $0x150] sm:$0xff]  ;;  %v70_v2 = vld [vmem:[%s2803_s0 + $0x178] sm:$0xff]  ;;  %v68_v4 = vld [vmem:[%s2803_s0 + $0x168] sm:$0xff]  ;;  %1695 = vset.pattern.permute.xlu1 %v1732_v56  ;;  %1697 = vset.pattern.permute.xlu0 %v1732_v56  ;;  %v1733_v57 = vmov 269488144  }
  0x11   :  { %v166_v5 = vadd.f32 %v66_v1, %v65_v0  ;;  %v172_v6 = vadd.f32 %v70_v2, %v69_v63  ;;  %v169_v7 = vadd.f32 %v68_v4, %v67_v3  ;;  %v75_v8 = vld [vmem:[%s2803_s0 + $0x1a0] sm:$0xff]  ;;  %v72_v10 = vld [vmem:[%s2803_s0 + $0x188] sm:$0xff]  ;;  %v73_v12 = vld [vmem:[%s2803_s0 + $0x190] sm:$0xff]  ;;  %1696 = vset.pattern.permute.xlu2 %v1732_v56  ;;  %v264_v58 = vunpack.c.l.s4 %v1733_v57 }
  0x12   :  { %v71_v9 = vld [vmem:[%s2803_s0 + $0x180] sm:$0xff]  ;;  %v76_v11 = vld [vmem:[%s2803_s0 + $0x1a8] sm:$0xff]  ;;  %v74_v13 = vld [vmem:[%s2803_s0 + $0x198] sm:$0xff]  ;;  %v1734_v59 = vmov 842150450  }
  0x13   :  { %v175_v14 = vadd.f32 %v72_v10, %v71_v9  ;;  %v181_v15 = vadd.f32 %v76_v11, %v75_v8  ;;  %v178_v16 = vadd.f32 %v74_v13, %v73_v12  ;;  %v81_v17 = vld [vmem:[%s2803_s0 + $0x1d0] sm:$0xff]  ;;  %v78_v19 = vld [vmem:[%s2803_s0 + $0x1b8] sm:$0xff]  ;;  %v79_v21 = vld [vmem:[%s2803_s0 + $0x1c0] sm:$0xff]  ;;  %v1736_v63 = vmov 1987475062  }
  0x14   :  { %122 = vadd.xlane.f32.xlu0 %v121_v24  ;;  %v77_v18 = vld [vmem:[%s2803_s0 + $0x1b0] sm:$0xff]  ;;  %v82_v20 = vld [vmem:[%s2803_s0 + $0x1d8] sm:$0xff]  ;;  %v80_v22 = vld [vmem:[%s2803_s0 + $0x1c8] sm:$0xff]  ;;  %v276_v0 = vunpack.c.l.s4 %v1736_v63  ;;  %v1998_v1 = vunpack.c.0.s8 %v264_v58 }
  0x15   :  { %128 = vadd.xlane.f32.xlu2 %v127_v25  ;;  %v184_v23 = vadd.f32 %v78_v19, %v77_v18  ;;  %v190_v24 = vadd.f32 %v82_v20, %v81_v17  ;;  %v187_v25 = vadd.f32 %v80_v22, %v79_v21  ;;  %v83_v27 = vld [vmem:[%s2803_s0 + $0x1e0] sm:$0xff]  ;;  %v84_v28 = vld [vmem:[%s2803_s0 + $0x1e8] sm:$0xff]  ;;  %v85_v30 = vld [vmem:[%s2803_s0 + $0x1f0] sm:$0xff] }
  0x16   :  { %125 = vadd.xlane.f32.xlu1 %v124_v26  ;;  %v87_v26 = vld [vmem:[%s2803_s0 + $0x200] sm:$0xff]  ;;  %v88_v29 = vld [vmem:[%s2803_s0 + $0x208] sm:$0xff]  ;;  %v86_v31 = vld [vmem:[%s2803_s0 + $0x1f8] sm:$0xff]  ;;  %v193_v32 = vadd.f32 %v84_v28, %v83_v27  ;;  %v2004_v4 = vunpack.c.0.s8 %v276_v0 }
  0x17   :  { %v89_v36 = vld [vmem:[%s2803_s0 + $0x210] sm:$0xff]  ;;  %v90_v37 = vld [vmem:[%s2803_s0 + $0x218] sm:$0xff]  ;;  %v91_v39 = vld [vmem:[%s2803_s0 + $0x220] sm:$0xff] }
  0x18   :  { %v94_v38 = vld [vmem:[%s2803_s0 + $0x238] sm:$0xff]  ;;  %v92_v40 = vld [vmem:[%s2803_s0 + $0x228] sm:$0xff]  ;;  %v202_v41 = vadd.f32 %v90_v37, %v89_v36  ;;  %v95_v45 = vld [vmem:[%s2803_s0 + $0x240] sm:$0xff] }
  0x19   :  { %v96_v46 = vld [vmem:[%s2803_s0 + $0x248] sm:$0xff]  ;;  %v97_v48 = vld [vmem:[%s2803_s0 + $0x250] sm:$0xff]  ;;  %v98_v49 = vld [vmem:[%s2803_s0 + $0x258] sm:$0xff] }
  0x1a   :  { %v100_v47 = vld [vmem:[%s2803_s0 + $0x268] sm:$0xff]  ;;  %v211_v50 = vadd.f32 %v96_v46, %v95_v45  ;;  %v102_v54 = vld [vmem:[%s2803_s0 + $0x278] sm:$0xff] }
  0x1c   :  { %131 = vadd.xlane.f32.xlu0 %v130_v33  ;;  %v199_v33 = vadd.f32 %v88_v29, %v87_v26 }
  0x1d   :  { %137 = vadd.xlane.f32.xlu2 %v136_v34  ;;  %v196_v34 = vadd.f32 %v86_v31, %v85_v30 }
  0x1e   :  { %134 = vadd.xlane.f32.xlu1 %v133_v35  ;;  %v93_v35 = vld [vmem:[%s2803_s0 + $0x230] sm:$0xff] }
  0x24   :  { %140 = vadd.xlane.f32.xlu0 %v139_v42  ;;  %v208_v42 = vadd.f32 %v94_v38, %v93_v35 }
  0x25   :  { %146 = vadd.xlane.f32.xlu2 %v145_v43  ;;  %v205_v43 = vadd.f32 %v92_v40, %v91_v39 }
  0x26   :  { %143 = vadd.xlane.f32.xlu1 %v142_v44  ;;  %v99_v44 = vld [vmem:[%s2803_s0 + $0x260] sm:$0xff] }
  0x2c   :  { %149 = vadd.xlane.f32.xlu0 %v148_v51  ;;  %v217_v51 = vadd.f32 %v100_v47, %v99_v44 }
  0x2d   :  { %155 = vadd.xlane.f32.xlu2 %v154_v52  ;;  %v214_v52 = vadd.f32 %v98_v49, %v97_v48 }
  0x2e   :  { %152 = vadd.xlane.f32.xlu1 %v151_v53  ;;  %v101_v53 = vld [vmem:[%s2803_s0 + $0x270] sm:$0xff] }
  0x2f   :  { %v220_v55 = vadd.f32 %v102_v54, %v101_v53 }
  0x34   :  { %158 = vadd.xlane.f32.xlu0 %v157_v60  ;;  %v268_v60 = vunpack.c.l.s4 %v1734_v59 }
  0x35   :  { %164 = vadd.xlane.f32.xlu2 %v163_v61  ;;  %v1735_v61 = vmov 1414812756  }
  0x36   :  { %161 = vadd.xlane.f32.xlu1 %v160_v62  ;;  %v272_v62 = vunpack.c.l.s4 %v1735_v61  ;;  %v2000_v2 = vunpack.c.0.s8 %v268_v60 }
  0x38   :  { %v2002_v3 = vunpack.c.0.s8 %v272_v62 }
  0x3c   :  { %167 = vadd.xlane.f32.xlu0 %v166_v5 }
  0x3d   :  { %173 = vadd.xlane.f32.xlu2 %v172_v6 }
  0x3e   :  { %170 = vadd.xlane.f32.xlu1 %v169_v7 }
  0x44   :  { %176 = vadd.xlane.f32.xlu0 %v175_v14 }
  0x45   :  { %182 = vadd.xlane.f32.xlu2 %v181_v15 }
  0x46   :  { %179 = vadd.xlane.f32.xlu1 %v178_v16 }
  0x4c   :  { %185 = vadd.xlane.f32.xlu0 %v184_v23 }
  0x4d   :  { %191 = vadd.xlane.f32.xlu2 %v190_v24 }
  0x4e   :  { %188 = vadd.xlane.f32.xlu1 %v187_v25 }
  0x54   :  { %194 = vadd.xlane.f32.xlu0 %v193_v32 }
  0x55   :  { %200 = vadd.xlane.f32.xlu2 %v199_v33 }
  0x56   :  { %197 = vadd.xlane.f32.xlu1 %v196_v34 }
  0x5c   :  { %203 = vadd.xlane.f32.xlu0 %v202_v41 }
  0x5d   :  { %209 = vadd.xlane.f32.xlu2 %v208_v42 }
  0x5e   :  { %206 = vadd.xlane.f32.xlu1 %v205_v43 }
  0x64   :  { %212 = vadd.xlane.f32.xlu0 %v211_v50 }
  0x65   :  { %218 = vadd.xlane.f32.xlu2 %v217_v51 }
  0x66   :  { %215 = vadd.xlane.f32.xlu1 %v214_v52 }
  0x6c   :  { %221 = vadd.xlane.f32.xlu0 %v220_v55 }
  0x77   :  { %v105_v5 = vpop.xlane.xlu0 %104 }
  0x78   :  { %v266_v6 = vperm.slane %v105_v5, %v1998_v1  ;;  %v270_v7 = vperm.slane %v105_v5, %v2000_v2  ;;  %v274_v8 = vperm.slane %v105_v5, %v2002_v3  ;;  %v278_v9 = vperm.slane %v105_v5, %v2004_v4  ;;  %v117_v21 = vpop.xlane.xlu2 %116 }
  0x79   :  { %v111_v10 = vpop.xlane.xlu1 %110  ;;  %v330_v22 = vperm.slane %v117_v21, %v1998_v1  ;;  %v334_v23 = vperm.slane %v117_v21, %v2000_v2  ;;  %v338_v25 = vperm.slane %v117_v21, %v2002_v3  ;;  %v342_v26 = vperm.slane %v117_v21, %v2004_v4 }
  0x7a   :  { %903 = vst [vmem:[#allocation1] ss:$4 sm:$0xff] %v266_v6  ;;  %v298_v15 = vperm.slane %v111_v10, %v1998_v1  ;;  %v302_v16 = vperm.slane %v111_v10, %v2000_v2  ;;  %v306_v17 = vperm.slane %v111_v10, %v2002_v3  ;;  %v310_v19 = vperm.slane %v111_v10, %v2004_v4 }
  0x7b   :  { %905 = vst [vmem:[#allocation1 + $0x1] ss:$4 sm:$0xff] %v270_v7 }
  0x7c   :  { %907 = vst [vmem:[#allocation1 + $0x2] ss:$4 sm:$0xff] %v274_v8 }
  0x7d   :  { %909 = vst [vmem:[#allocation1 + $0x3] ss:$4 sm:$0xff] %v278_v9 }
  0x7f   :  { %v108_v11 = vpop.xlane.xlu0 %107 }
  0x80   :  { %v282_v12 = vperm.slane %v108_v11, %v1998_v1  ;;  %v286_v13 = vperm.slane %v108_v11, %v2000_v2  ;;  %v290_v14 = vperm.slane %v108_v11, %v2002_v3  ;;  %v294_v20 = vperm.slane %v108_v11, %v2004_v4  ;;  %v120_v31 = vpop.xlane.xlu2 %119 }
  0x81   :  { %v114_v24 = vpop.xlane.xlu1 %113  ;;  %v346_v40 = vperm.slane %v120_v31, %v1998_v1  ;;  %v350_v41 = vperm.slane %v120_v31, %v2000_v2  ;;  %v354_v43 = vperm.slane %v120_v31, %v2002_v3  ;;  %v358_v44 = vperm.slane %v120_v31, %v2004_v4 }
  0x82   :  { %911 = vst [vmem:[#allocation1 + $0x20] ss:$4 sm:$0xff] %v282_v12  ;;  %v314_v29 = vperm.slane %v114_v24, %v1998_v1  ;;  %v318_v30 = vperm.slane %v114_v24, %v2000_v2  ;;  %v322_v32 = vperm.slane %v114_v24, %v2002_v3  ;;  %v326_v33 = vperm.slane %v114_v24, %v2004_v4 }
  0x83   :  { %913 = vst [vmem:[#allocation1 + $0x21] ss:$4 sm:$0xff] %v286_v13 }
  0x84   :  { %v918_v18 = vld.sshfl [vmem:[#allocation1] sm:$0xff pattern:$0x73625140]  ;;  %915 = vst [vmem:[#allocation1 + $0x22] ss:$4 sm:$0xff] %v290_v14 }
  0x85   :  { %920 = vst [vmem:[#allocation1] ss:$4 sm:$0xff] %v298_v15  ;;  %1111 = vperm.xlu1 %1695, %v918_v18  }
  0x86   :  { %921 = vst [vmem:[#allocation1 + $0x1] ss:$4 sm:$0xff] %v302_v16 }
  0x87   :  { %922 = vst [vmem:[#allocation1 + $0x2] ss:$4 sm:$0xff] %v306_v17  ;;  %v123_v34 = vpop.xlane.xlu0 %122 }
  0x88   :  { %923 = vst [vmem:[#allocation1 + $0x3] ss:$4 sm:$0xff] %v310_v19  ;;  %v362_v35 = vperm.slane %v123_v34, %v1998_v1  ;;  %v366_v36 = vperm.slane %v123_v34, %v2000_v2  ;;  %v370_v37 = vperm.slane %v123_v34, %v2002_v3  ;;  %v374_v39 = vperm.slane %v123_v34, %v2004_v4  ;;  %v129_v42 = vpop.xlane.xlu2 %128 }
  0x89   :  { %917 = vst [vmem:[#allocation1 + $0x23] ss:$4 sm:$0xff] %v294_v20  ;;  %v126_v46 = vpop.xlane.xlu1 %125  ;;  %v394_v47 = vperm.slane %v129_v42, %v1998_v1  ;;  %v398_v48 = vperm.slane %v129_v42, %v2000_v2  ;;  %v402_v49 = vperm.slane %v129_v42, %v2002_v3  ;;  %v406_v50 = vperm.slane %v129_v42, %v2004_v4 }
  0x8a   :  { %v378_v53 = vperm.slane %v126_v46, %v1998_v1  ;;  %v382_v54 = vperm.slane %v126_v46, %v2000_v2  ;;  %v386_v55 = vperm.slane %v126_v46, %v2002_v3  ;;  %v390_v57 = vperm.slane %v126_v46, %v2004_v4 }
  0x8f   :  { %v928_v27 = vld.sshfl [vmem:[#allocation1] sm:$0xff pattern:$0x73625140]  ;;  %v132_v59 = vpop.xlane.xlu0 %131 }
  0x90   :  { %930 = vst [vmem:[#allocation1] ss:$4 sm:$0xff] %v330_v22  ;;  %v919_v28 = vld.sshfl [vmem:[#allocation1 + $0x20] sm:$0xff pattern:$0x73625140]  ;;  %1117 = vperm.xlu0 %1697, %v928_v27   ;;  %v2038_v52 = vpop.xlane.xlu2 %137  ;;  %v410_v6 = vperm.slane %v132_v59, %v1998_v1  ;;  %v414_v7 = vperm.slane %v132_v59, %v2000_v2  ;;  %v418_v8 = vperm.slane %v132_v59, %v2002_v3 }
  0x91   :  { %931 = vst [vmem:[#allocation1 + $0x1] ss:$4 sm:$0xff] %v334_v23  ;;  %1114 = vperm.xlu2 %1696, %v919_v28   ;;  %v135_v58 = vpop.xlane.xlu1 %134  ;;  %v422_v10 = vperm.slane %v132_v59, %v2004_v4  ;;  %v442_v19 = vperm.slane %v2038_v52, %v1998_v1  ;;  %v446_v20 = vperm.slane %v2038_v52, %v2000_v2 }
  0x92   :  { %932 = vst [vmem:[#allocation1 + $0x2] ss:$4 sm:$0xff] %v338_v25  ;;  %v426_v60 = vperm.slane %v135_v58, %v1998_v1  ;;  %v430_v61 = vperm.slane %v135_v58, %v2000_v2  ;;  %v434_v62 = vperm.slane %v135_v58, %v2002_v3  ;;  %v438_v5 = vperm.slane %v135_v58, %v2004_v4 }
  0x93   :  { %933 = vst [vmem:[#allocation1 + $0x3] ss:$4 sm:$0xff] %v342_v26  ;;  %v450_v21 = vperm.slane %v2038_v52, %v2002_v3  ;;  %v454_v23 = vperm.slane %v2038_v52, %v2004_v4 }
  0x94   :  { %924 = vst [vmem:[#allocation1 + $0x20] ss:$4 sm:$0xff] %v314_v29 }
  0x95   :  { %925 = vst [vmem:[#allocation1 + $0x21] ss:$4 sm:$0xff] %v318_v30 }
  0x96   :  { %926 = vst [vmem:[#allocation1 + $0x22] ss:$4 sm:$0xff] %v322_v32 }
  0x97   :  { %927 = vst [vmem:[#allocation1 + $0x23] ss:$4 sm:$0xff] %v326_v33  ;;  %v141_v12 = vpop.xlane.xlu0 %140 }
  0x98   :  { %v147_v0 = vpop.xlane.xlu2 %146  ;;  %v458_v13 = vperm.slane %v141_v12, %v1998_v1  ;;  %v462_v14 = vperm.slane %v141_v12, %v2000_v2  ;;  %v466_v16 = vperm.slane %v141_v12, %v2002_v3  ;;  %v470_v18 = vperm.slane %v141_v12, %v2004_v4 }
  0x99   :  { %v144_v11 = vpop.xlane.xlu1 %143  ;;  %v490_v26 = vperm.slane %v147_v0, %v1998_v1  ;;  %v494_v27 = vperm.slane %v147_v0, %v2000_v2  ;;  %v498_v29 = vperm.slane %v147_v0, %v2002_v3  ;;  %v502_v30 = vperm.slane %v147_v0, %v2004_v4 }
  0x9a   :  { %v938_v38 = vld.sshfl [vmem:[#allocation1] sm:$0xff pattern:$0x73625140]  ;;  %v474_v32 = vperm.slane %v144_v11, %v1998_v1  ;;  %v478_v33 = vperm.slane %v144_v11, %v2000_v2 }
  0x9b   :  { %940 = vst [vmem:[#allocation1] ss:$4 sm:$0xff] %v362_v35  ;;  %1123 = vperm.xlu1 %1695, %v938_v38   ;;  %v482_v35 = vperm.slane %v144_v11, %v2002_v3  ;;  %v486_v38 = vperm.slane %v144_v11, %v2004_v4 }
  0x9c   :  { %941 = vst [vmem:[#allocation1 + $0x1] ss:$4 sm:$0xff] %v366_v36 }
  0x9d   :  { %942 = vst [vmem:[#allocation1 + $0x2] ss:$4 sm:$0xff] %v370_v37 }
  0x9e   :  { %v929_v45 = vld.sshfl [vmem:[#allocation1 + $0x20] sm:$0xff pattern:$0x73625140]  ;;  %943 = vst [vmem:[#allocation1 + $0x3] ss:$4 sm:$0xff] %v374_v39 }
  0x9f   :  { %934 = vst [vmem:[#allocation1 + $0x20] ss:$4 sm:$0xff] %v346_v40  ;;  %1120 = vperm.xlu2 %1696, %v929_v45   ;;  %v150_v25 = vpop.xlane.xlu0 %149 }
  0xa0   :  { %935 = vst [vmem:[#allocation1 + $0x21] ss:$4 sm:$0xff] %v350_v41  ;;  %v2054_v15 = vpop.xlane.xlu2 %155  ;;  %v506_v45 = vperm.slane %v150_v25, %v1998_v1 }
  0xa1   :  { %936 = vst [vmem:[#allocation1 + $0x22] ss:$4 sm:$0xff] %v354_v43  ;;  %v153_v22 = vpop.xlane.xlu1 %152  ;;  %v538_v59 = vperm.slane %v2054_v15, %v1998_v1 }
  0xa2   :  { %937 = vst [vmem:[#allocation1 + $0x23] ss:$4 sm:$0xff] %v358_v44  ;;  %v522_v40 = vperm.slane %v153_v22, %v1998_v1  ;;  %v526_v41 = vperm.slane %v153_v22, %v2000_v2  ;;  %v530_v42 = vperm.slane %v153_v22, %v2002_v3  ;;  %v534_v44 = vperm.slane %v153_v22, %v2004_v4 }
  0xa5   :  { %v948_v51 = vld.sshfl [vmem:[#allocation1] sm:$0xff pattern:$0x73625140] }
  0xa6   :  { %950 = vst [vmem:[#allocation1] ss:$4 sm:$0xff] %v394_v47  ;;  %1129 = vperm.xlu1 %1695, %v948_v51   ;;  %v510_v47 = vperm.slane %v150_v25, %v2000_v2  ;;  %v518_v51 = vperm.slane %v150_v25, %v2004_v4 }
  0xa7   :  { %951 = vst [vmem:[#allocation1 + $0x1] ss:$4 sm:$0xff] %v398_v48  ;;  %v159_v36 = vpop.xlane.xlu0 %158 }
  0xa8   :  { %952 = vst [vmem:[#allocation1 + $0x2] ss:$4 sm:$0xff] %v402_v49  ;;  %v2068_v28 = vpop.xlane.xlu2 %164  ;;  %v514_v49 = vperm.slane %v150_v25, %v2002_v3 }
  0xa9   :  { %v939_v56 = vld.sshfl [vmem:[#allocation1 + $0x20] sm:$0xff pattern:$0x73625140]  ;;  %953 = vst [vmem:[#allocation1 + $0x3] ss:$4 sm:$0xff] %v406_v50  ;;  %v2074_v34 = vpop.xlane.xlu1 %161 }
  0xaa   :  { %944 = vst [vmem:[#allocation1 + $0x20] ss:$4 sm:$0xff] %v378_v53  ;;  %1126 = vperm.xlu2 %1696, %v939_v56   ;;  %v554_v53 = vperm.slane %v159_v36, %v1998_v1 }
  0xab   :  { %945 = vst [vmem:[#allocation1 + $0x21] ss:$4 sm:$0xff] %v382_v54  ;;  %v558_v54 = vperm.slane %v159_v36, %v2000_v2 }
  0xac   :  { %946 = vst [vmem:[#allocation1 + $0x22] ss:$4 sm:$0xff] %v386_v55  ;;  %v562_v55 = vperm.slane %v159_v36, %v2002_v3 }
  0xad   :  { %947 = vst [vmem:[#allocation1 + $0x23] ss:$4 sm:$0xff] %v390_v57  ;;  %v566_v57 = vperm.slane %v159_v36, %v2004_v4 }
  0xaf   :  { %v2088_v48 = vpop.xlane.xlu0 %167 }
  0xb0   :  { %v958_v63 = vld.sshfl [vmem:[#allocation1] sm:$0xff pattern:$0x73625140]  ;;  %v2078_v39 = vpop.xlane.xlu2 %173 }
  0xb1   :  { %960 = vst [vmem:[#allocation1] ss:$4 sm:$0xff] %v426_v60  ;;  %1135 = vperm.xlu1 %1695, %v958_v63   ;;  %v2085_v46 = vpop.xlane.xlu1 %170  ;;  %v550_v63 = vperm.slane %v2054_v15, %v2004_v4 }
  0xb2   :  { %961 = vst [vmem:[#allocation1 + $0x1] ss:$4 sm:$0xff] %v430_v61  ;;  %v542_v61 = vperm.slane %v2054_v15, %v2000_v2  ;;  %v626_v22 = vperm.slane %v2085_v46, %v2002_v3  ;;  %v630_v25 = vperm.slane %v2085_v46, %v2004_v4 }
  0xb3   :  { %962 = vst [vmem:[#allocation1 + $0x2] ss:$4 sm:$0xff] %v434_v62  ;;  %v546_v62 = vperm.slane %v2054_v15, %v2002_v3  ;;  %v578_v15 = vperm.slane %v2074_v34, %v2002_v3 }
  0xb4   :  { %v949_v9 = vld.sshfl [vmem:[#allocation1 + $0x20] sm:$0xff pattern:$0x73625140]  ;;  %963 = vst [vmem:[#allocation1 + $0x3] ss:$4 sm:$0xff] %v438_v5 }
  0xb5   :  { %954 = vst [vmem:[#allocation1 + $0x20] ss:$4 sm:$0xff] %v410_v6  ;;  %1132 = vperm.xlu2 %1696, %v949_v9   ;;  %v586_v6 = vperm.slane %v2068_v28, %v1998_v1 }
  0xb6   :  { %955 = vst [vmem:[#allocation1 + $0x21] ss:$4 sm:$0xff] %v414_v7  ;;  %v590_v7 = vperm.slane %v2068_v28, %v2000_v2 }
  0xb7   :  { %956 = vst [vmem:[#allocation1 + $0x22] ss:$4 sm:$0xff] %v418_v8  ;;  %v2102_v60 = vpop.xlane.xlu0 %176  ;;  %v594_v8 = vperm.slane %v2068_v28, %v2002_v3 }
  0xb8   :  { %957 = vst [vmem:[#allocation1 + $0x23] ss:$4 sm:$0xff] %v422_v10  ;;  %v2092_v52 = vpop.xlane.xlu2 %182  ;;  %v598_v10 = vperm.slane %v2068_v28, %v2004_v4  ;;  %v610_v28 = vperm.slane %v2088_v48, %v2002_v3  ;;  %v658_v36 = vperm.slane %v2102_v60, %v2002_v3 }
  0xb9   :  { %v2098_v58 = vpop.xlane.xlu1 %179 }
  0xbb   :  { %v968_v17 = vld.sshfl [vmem:[#allocation1] sm:$0xff pattern:$0x73625140] }
  0xbc   :  { %970 = vst [vmem:[#allocation1] ss:$4 sm:$0xff] %v458_v13  ;;  %v570_v13 = vperm.slane %v2074_v34, %v1998_v1 }
  0xbd   :  { %971 = vst [vmem:[#allocation1 + $0x1] ss:$4 sm:$0xff] %v462_v14  ;;  %1141 = vperm.xlu2 %1696, %v968_v17   ;;  %v574_v14 = vperm.slane %v2074_v34, %v2000_v2  ;;  %v582_v17 = vperm.slane %v2074_v34, %v2004_v4  ;;  %v650_v34 = vperm.slane %v2102_v60, %v1998_v1 }
  0xbe   :  { %972 = vst [vmem:[#allocation1 + $0x2] ss:$4 sm:$0xff] %v466_v16 }
  0xbf   :  { %v959_v24 = vld.sshfl [vmem:[#allocation1 + $0x20] sm:$0xff pattern:$0x73625140]  ;;  %973 = vst [vmem:[#allocation1 + $0x3] ss:$4 sm:$0xff] %v470_v18  ;;  %v2122_v12 = vpop.xlane.xlu0 %185 }
  0xc0   :  { %964 = vst [vmem:[#allocation1 + $0x20] ss:$4 sm:$0xff] %v442_v19  ;;  %1138 = vperm.xlu0 %1697, %v959_v24   ;;  %v2110_v5 = vpop.xlane.xlu2 %191  ;;  %v618_v19 = vperm.slane %v2085_v46, %v1998_v1 }
  0xc1   :  { %965 = vst [vmem:[#allocation1 + $0x21] ss:$4 sm:$0xff] %v446_v20  ;;  %v2118_v9 = vpop.xlane.xlu1 %188  ;;  %v622_v20 = vperm.slane %v2085_v46, %v2000_v2  ;;  %v646_v46 = vperm.slane %v2078_v39, %v2004_v4 }
  0xc2   :  { %966 = vst [vmem:[#allocation1 + $0x22] ss:$4 sm:$0xff] %v450_v21 }
  0xc3   :  { %967 = vst [vmem:[#allocation1 + $0x23] ss:$4 sm:$0xff] %v454_v23 }
  0xc6   :  { %v978_v31 = vld.sshfl [vmem:[#allocation1] sm:$0xff pattern:$0x73625140] }
  0xc7   :  { %980 = vst [vmem:[#allocation1] ss:$4 sm:$0xff] %v490_v26  ;;  %v2142_v23 = vpop.xlane.xlu0 %194  ;;  %v602_v26 = vperm.slane %v2088_v48, %v1998_v1 }
  0xc8   :  { %981 = vst [vmem:[#allocation1 + $0x1] ss:$4 sm:$0xff] %v494_v27  ;;  %1147 = vperm.xlu0 %1697, %v978_v31   ;;  %v2132_v18 = vpop.xlane.xlu2 %200  ;;  %v606_v27 = vperm.slane %v2088_v48, %v2000_v2 }
  0xc9   :  { %982 = vst [vmem:[#allocation1 + $0x2] ss:$4 sm:$0xff] %v498_v29  ;;  %v2138_v21 = vpop.xlane.xlu1 %197 }
  0xca   :  { %v969_v37 = vld.sshfl [vmem:[#allocation1 + $0x20] sm:$0xff pattern:$0x73625140]  ;;  %983 = vst [vmem:[#allocation1 + $0x3] ss:$4 sm:$0xff] %v502_v30  ;;  %v614_v30 = vperm.slane %v2088_v48, %v2004_v4 }
  0xcb   :  { %974 = vst [vmem:[#allocation1 + $0x20] ss:$4 sm:$0xff] %v474_v32  ;;  %1144 = vperm.xlu1 %1695, %v969_v37  }
  0xcc   :  { %975 = vst [vmem:[#allocation1 + $0x21] ss:$4 sm:$0xff] %v478_v33 }
  0xcd   :  { %976 = vst [vmem:[#allocation1 + $0x22] ss:$4 sm:$0xff] %v482_v35  ;;  %v654_v35 = vperm.slane %v2102_v60, %v2000_v2 }
  0xce   :  { %977 = vst [vmem:[#allocation1 + $0x23] ss:$4 sm:$0xff] %v486_v38  ;;  %v662_v38 = vperm.slane %v2102_v60, %v2004_v4  ;;  %v670_v60 = vperm.slane %v2098_v58, %v2000_v2 }
  0xcf   :  { %v2158_v33 = vpop.xlane.xlu0 %203 }
  0xd0   :  { %v2154_v31 = vpop.xlane.xlu2 %209 }
  0xd1   :  { %v988_v43 = vld.sshfl [vmem:[#allocation1] sm:$0xff pattern:$0x73625140]  ;;  %v2156_v32 = vpop.xlane.xlu1 %206 }
  0xd2   :  { %990 = vst [vmem:[#allocation1] ss:$4 sm:$0xff] %v522_v40  ;;  %v634_v40 = vperm.slane %v2078_v39, %v1998_v1 }
  0xd3   :  { %991 = vst [vmem:[#allocation1 + $0x1] ss:$4 sm:$0xff] %v526_v41  ;;  %1153 = vperm.xlu1 %1695, %v988_v43   ;;  %v638_v41 = vperm.slane %v2078_v39, %v2000_v2 }
  0xd4   :  { %992 = vst [vmem:[#allocation1 + $0x2] ss:$4 sm:$0xff] %v530_v42  ;;  %v642_v42 = vperm.slane %v2078_v39, %v2002_v3  ;;  %v690_v39 = vperm.slane %v2092_v52, %v2002_v3 }
  0xd5   :  { %v979_v50 = vld.sshfl [vmem:[#allocation1 + $0x20] sm:$0xff pattern:$0x73625140]  ;;  %993 = vst [vmem:[#allocation1 + $0x3] ss:$4 sm:$0xff] %v534_v44  ;;  %v1230_v44 = vlaneseq }
  0xd6   :  { %984 = vst [vmem:[#allocation1 + $0x20] ss:$4 sm:$0xff] %v506_v45  ;;  %1150 = vperm.xlu2 %1696, %v979_v50   ;;  %v682_v50 = vperm.slane %v2092_v52, %v1998_v1 }
  0xd7   :  { %985 = vst [vmem:[#allocation1 + $0x21] ss:$4 sm:$0xff] %v510_v47  ;;  %v2180_v48 = vpop.xlane.xlu0 %212 }
  0xd8   :  { %986 = vst [vmem:[#allocation1 + $0x22] ss:$4 sm:$0xff] %v514_v49  ;;  %v2174_v43 = vpop.xlane.xlu2 %218  ;;  %v2183_v49 = vand.u32 127, %v1230_v44 }
  0xd9   :  { %987 = vst [vmem:[#allocation1 + $0x23] ss:$4 sm:$0xff] %v518_v51  ;;  %v2176_v45 = vpop.xlane.xlu1 %215  ;;  %v686_v51 = vperm.slane %v2092_v52, %v2000_v2 }
  0xdc   :  { %v998_v56 = vld.sshfl [vmem:[#allocation1] sm:$0xff pattern:$0x73625140] }
  0xdd   :  { %1000 = vst [vmem:[#allocation1] ss:$4 sm:$0xff] %v554_v53  ;;  %v694_v53 = vperm.slane %v2092_v52, %v2004_v4  ;;  %v674_v52 = vperm.slane %v2098_v58, %v2002_v3 }
  0xde   :  { %1001 = vst [vmem:[#allocation1 + $0x1] ss:$4 sm:$0xff] %v558_v54  ;;  %1159 = vperm.xlu2 %1696, %v998_v56   ;;  %v666_v56 = vperm.slane %v2098_v58, %v1998_v1 }
  0xdf   :  { %1002 = vst [vmem:[#allocation1 + $0x2] ss:$4 sm:$0xff] %v562_v55  ;;  %v2194_v55 = vadd.s32 4294967288, %v2183_v49 }
  0xe0   :  { %v989_v0 = vld.sshfl [vmem:[#allocation1 + $0x20] sm:$0xff pattern:$0x73625140]  ;;  %1003 = vst [vmem:[#allocation1 + $0x3] ss:$4 sm:$0xff] %v566_v57 }
  0xe1   :  { %994 = vst [vmem:[#allocation1 + $0x20] ss:$4 sm:$0xff] %v538_v59  ;;  %1156 = vperm.xlu0 %1697, %v989_v0   ;;  %v2198_v59 = vpop.xlane.xlu0 %221 }
  0xe2   :  { %995 = vst [vmem:[#allocation1 + $0x21] ss:$4 sm:$0xff] %v542_v61 }
  0xe3   :  { %996 = vst [vmem:[#allocation1 + $0x22] ss:$4 sm:$0xff] %v546_v62 }
  0xe4   :  { %997 = vst [vmem:[#allocation1 + $0x23] ss:$4 sm:$0xff] %v550_v63  ;;  %v678_v63 = vperm.slane %v2098_v58, %v2004_v4  ;;  %v2214_v58 = vadd.s32 4294967280, %v2183_v49 }
  0xe7   :  { %v1008_v11 = vld.sshfl [vmem:[#allocation1] sm:$0xff pattern:$0x73625140] }
  0xe8   :  { %1010 = vst [vmem:[#allocation1] ss:$4 sm:$0xff] %v586_v6 }
  0xe9   :  { %1011 = vst [vmem:[#allocation1 + $0x1] ss:$4 sm:$0xff] %v590_v7  ;;  %1165 = vperm.xlu0 %1697, %v1008_v11  }
  0xea   :  { %1012 = vst [vmem:[#allocation1 + $0x2] ss:$4 sm:$0xff] %v594_v8  ;;  %v714_v8 = vperm.slane %v2118_v9, %v1998_v1 }
  0xeb   :  { %v999_v16 = vld.sshfl [vmem:[#allocation1 + $0x20] sm:$0xff pattern:$0x73625140]  ;;  %1013 = vst [vmem:[#allocation1 + $0x3] ss:$4 sm:$0xff] %v598_v10  ;;  %v1115_v61 = vpop.permute.xlu2 %1114  ;;  %v718_v10 = vperm.slane %v2118_v9, %v2000_v2 }
  0xec   :  { %1004 = vst [vmem:[#allocation1 + $0x20] ss:$4 sm:$0xff] %v570_v13  ;;  %1162 = vperm.xlu1 %1695, %v999_v16   ;;  %v1234_v0 = vperm.slane %v1115_v61, %v2194_v55  ;;  %v722_v13 = vperm.slane %v2118_v9, %v2002_v3  ;;  %v786_v61 = vperm.slane %v2132_v18, %v2002_v3 }
  0xed   :  { %1005 = vst [vmem:[#allocation1 + $0x21] ss:$4 sm:$0xff] %v574_v14 }
  0xee   :  { %1006 = vst [vmem:[#allocation1 + $0x22] ss:$4 sm:$0xff] %v578_v15  ;;  %v726_v15 = vperm.slane %v2118_v9, %v2004_v4  ;;  %v706_v9 = vperm.slane %v2122_v12, %v2002_v3 }
  0xef   :  { %1007 = vst [vmem:[#allocation1 + $0x23] ss:$4 sm:$0xff] %v582_v17  ;;  %v698_v17 = vperm.slane %v2122_v12, %v1998_v1 }
  0xf2   :  { %v1018_v24 = vld.sshfl [vmem:[#allocation1] sm:$0xff pattern:$0x73625140] }
  0xf3   :  { %1020 = vst [vmem:[#allocation1] ss:$4 sm:$0xff] %v618_v19  ;;  %v2224_v19 = vadd.s32 4294967272, %v2183_v49 }
  0xf4   :  { %1021 = vst [vmem:[#allocation1 + $0x1] ss:$4 sm:$0xff] %v622_v20  ;;  %1171 = vperm.xlu1 %1695, %v1018_v24  }
  0xf5   :  { %1022 = vst [vmem:[#allocation1 + $0x2] ss:$4 sm:$0xff] %v626_v22  ;;  %v702_v22 = vperm.slane %v2122_v12, %v2000_v2 }
  0xf6   :  { %v1009_v29 = vld.sshfl [vmem:[#allocation1 + $0x20] sm:$0xff pattern:$0x73625140]  ;;  %1023 = vst [vmem:[#allocation1 + $0x3] ss:$4 sm:$0xff] %v630_v25 }
  0xf7   :  { %1014 = vst [vmem:[#allocation1 + $0x20] ss:$4 sm:$0xff] %v602_v26  ;;  %1168 = vperm.xlu2 %1696, %v1009_v29   ;;  %v1112_v57 = vpop.permute.xlu1 %1111  ;;  %v710_v26 = vperm.slane %v2122_v12, %v2004_v4  ;;  %v746_v29 = vperm.slane %v2142_v23, %v1998_v1 }
  0xf8   :  { %1015 = vst [vmem:[#allocation1 + $0x21] ss:$4 sm:$0xff] %v606_v27  ;;  %v1232_v6 = vperm.slane %v1112_v57, %v2183_v49  ;;  %v2269_v57 = vadd.s32 4294967248, %v2183_v49 }
  0xf9   :  { %1016 = vst [vmem:[#allocation1 + $0x22] ss:$4 sm:$0xff] %v610_v28  ;;  %v1121_v20 = vpop.permute.xlu2 %1120 }
  0xfa   :  { %1017 = vst [vmem:[#allocation1 + $0x23] ss:$4 sm:$0xff] %v614_v30  ;;  %v1236_v7 = vsel %vm1235_vm0, %v1234_v0, %v1232_v6  ;;  %v1242_v27 = vperm.slane %v1121_v20, %v2224_v19  ;;  %v750_v30 = vperm.slane %v2142_v23, %v2000_v2  ;;  %v762_v6 = vperm.slane %v2138_v21, %v1998_v1 }
  0xfb   :  { %v810_v20 = vperm.slane %v2156_v32, %v1998_v1 }
  0xfd   :  { %v1028_v37 = vld.sshfl [vmem:[#allocation1] sm:$0xff pattern:$0x73625140] }
  0xfe   :  { %1030 = vst [vmem:[#allocation1] ss:$4 sm:$0xff] %v650_v34  ;;  %v2240_v34 = vadd.s32 4294967264, %v2183_v49 }
  0xff   :  { %1031 = vst [vmem:[#allocation1 + $0x1] ss:$4 sm:$0xff] %v654_v35  ;;  %1177 = vperm.xlu2 %1696, %v1028_v37   ;;  %v754_v35 = vperm.slane %v2142_v23, %v2002_v3 }
 0x100   :  { %1032 = vst [vmem:[#allocation1 + $0x2] ss:$4 sm:$0xff] %v658_v36  ;;  %v758_v36 = vperm.slane %v2142_v23, %v2004_v4  ;;  %v738_v23 = vperm.slane %v2110_v5, %v2002_v3 }
 0x101   :  { %v1019_v47 = vld.sshfl [vmem:[#allocation1 + $0x20] sm:$0xff pattern:$0x73625140]  ;;  %1033 = vst [vmem:[#allocation1 + $0x3] ss:$4 sm:$0xff] %v662_v38 }
 0x102   :  { %1024 = vst [vmem:[#allocation1 + $0x20] ss:$4 sm:$0xff] %v634_v40  ;;  %1174 = vperm.xlu0 %1697, %v1019_v47   ;;  %v1118_v11 = vpop.permute.xlu0 %1117 }
 0x103   :  { %1025 = vst [vmem:[#allocation1 + $0x21] ss:$4 sm:$0xff] %v638_v41  ;;  %v1238_v16 = vperm.slane %v1118_v11, %v2214_v58  ;;  %v730_v41 = vperm.slane %v2110_v5, %v1998_v1  ;;  %v770_v11 = vperm.slane %v2138_v21, %v2002_v3 }
 0x104   :  { %1026 = vst [vmem:[#allocation1 + $0x22] ss:$4 sm:$0xff] %v642_v42  ;;  %v1127_v38 = vpop.permute.xlu2 %1126  ;;  %v2250_v42 = vadd.s32 4294967256, %v2183_v49 }
 0x105   :  { %1027 = vst [vmem:[#allocation1 + $0x23] ss:$4 sm:$0xff] %v646_v46  ;;  %v1240_v24 = vsel %vm1239_vm1, %v1238_v16, %v1236_v7  ;;  %v734_v46 = vperm.slane %v2110_v5, %v2000_v2  ;;  %v766_v7 = vperm.slane %v2138_v21, %v2000_v2 }
 0x106   :  { %v1244_v28 = vsel %vm1243_vm2, %v1242_v27, %v1240_v24  ;;  %v818_v24 = vperm.slane %v2156_v32, %v2002_v3  ;;  %v798_v27 = vperm.slane %v2158_v33, %v2000_v2 }
 0x108   :  { %v1038_v54 = vld.sshfl [vmem:[#allocation1] sm:$0xff pattern:$0x73625140] }
 0x109   :  { %1040 = vst [vmem:[#allocation1] ss:$4 sm:$0xff] %v682_v50  ;;  %v742_v50 = vperm.slane %v2110_v5, %v2004_v4  ;;  %v2266_v5 = vadd.s32 4294967240, %v2183_v49 }
 0x10a   :  { %1041 = vst [vmem:[#allocation1 + $0x1] ss:$4 sm:$0xff] %v686_v51  ;;  %1183 = vperm.xlu0 %1697, %v1038_v54   ;;  %v778_v54 = vperm.slane %v2132_v18, %v1998_v1 }
 0x10b   :  { %1042 = vst [vmem:[#allocation1 + $0x2] ss:$4 sm:$0xff] %v690_v39  ;;  %v1250_v39 = vperm.slane %v1127_v38, %v2250_v42 }
 0x10c   :  { %v1029_v62 = vld.sshfl [vmem:[#allocation1 + $0x20] sm:$0xff pattern:$0x73625140]  ;;  %1043 = vst [vmem:[#allocation1 + $0x3] ss:$4 sm:$0xff] %v694_v53 }
 0x10d   :  { %1034 = vst [vmem:[#allocation1 + $0x20] ss:$4 sm:$0xff] %v666_v56  ;;  %1180 = vperm.xlu1 %1695, %v1029_v62   ;;  %v1124_v12 = vpop.permute.xlu1 %1123  ;;  %v782_v56 = vperm.slane %v2132_v18, %v2000_v2  ;;  %v790_v62 = vperm.slane %v2132_v18, %v2004_v4  ;;  %v774_v18 = vperm.slane %v2138_v21, %v2004_v4 }
 0x10e   :  { %1035 = vst [vmem:[#allocation1 + $0x21] ss:$4 sm:$0xff] %v670_v60  ;;  %v1246_v40 = vperm.slane %v1124_v12, %v2240_v34  ;;  %v814_v21 = vperm.slane %v2156_v32, %v2000_v2  ;;  %v846_v12 = vperm.slane %v2180_v48, %v2000_v2 }
 0x10f   :  { %1036 = vst [vmem:[#allocation1 + $0x22] ss:$4 sm:$0xff] %v674_v52  ;;  %v1133_v52 = vpop.permute.xlu2 %1132 }
 0x110   :  { %1037 = vst [vmem:[#allocation1 + $0x23] ss:$4 sm:$0xff] %v678_v63  ;;  %v1248_v47 = vsel %vm1247_vm3, %v1246_v40, %v1244_v28  ;;  %v802_v28 = vperm.slane %v2158_v33, %v2002_v3  ;;  %v854_v40 = vperm.slane %v2180_v48, %v2004_v4 }
 0x111   :  { %v1252_v53 = vsel %vm1251_vm4, %v1250_v39, %v1248_v47  ;;  %v826_v47 = vperm.slane %v2154_v31, %v1998_v1  ;;  %v834_v39 = vperm.slane %v2154_v31, %v2002_v3 }
 0x113   :  { %v1048_v14 = vld.sshfl [vmem:[#allocation1] sm:$0xff pattern:$0x73625140] }
 0x114   :  { %1050 = vst [vmem:[#allocation1] ss:$4 sm:$0xff] %v714_v8  ;;  %v1258_v8 = vperm.slane %v1133_v52, %v2266_v5  ;;  %v2343_v52 = vadd.s32 4294967200, %v2183_v49 }
 0x115   :  { %1051 = vst [vmem:[#allocation1 + $0x1] ss:$4 sm:$0xff] %v718_v10  ;;  %1189 = vperm.xlu1 %1695, %v1048_v14  }
 0x116   :  { %1052 = vst [vmem:[#allocation1 + $0x2] ss:$4 sm:$0xff] %v722_v13 }
 0x117   :  { %v1039_v25 = vld.sshfl [vmem:[#allocation1 + $0x20] sm:$0xff pattern:$0x73625140]  ;;  %1053 = vst [vmem:[#allocation1 + $0x3] ss:$4 sm:$0xff] %v726_v15  ;;  %v2288_v15 = vadd.s32 4294967232, %v2183_v49  ;;  %v1142_v38 = vpop.permute.xlu2 %1141 }
 0x118   :  { %1044 = vst [vmem:[#allocation1 + $0x20] ss:$4 sm:$0xff] %v698_v17  ;;  %1186 = vperm.xlu2 %1696, %v1039_v25   ;;  %v1130_v60 = vpop.permute.xlu1 %1129 }
 0x119   :  { %1045 = vst [vmem:[#allocation1 + $0x21] ss:$4 sm:$0xff] %v702_v22  ;;  %v1254_v0 = vperm.slane %v1130_v60, %v2269_v57  ;;  %v2340_v60 = vadd.s32 4294967208, %v2183_v49 }
 0x11a   :  { %1046 = vst [vmem:[#allocation1 + $0x22] ss:$4 sm:$0xff] %v706_v9  ;;  %v822_v9 = vperm.slane %v2156_v32, %v2004_v4  ;;  %v842_v32 = vperm.slane %v2180_v48, %v1998_v1 }
 0x11b   :  { %1047 = vst [vmem:[#allocation1 + $0x23] ss:$4 sm:$0xff] %v710_v26  ;;  %v1256_v10 = vsel %vm1255_vm5, %v1254_v0, %v1252_v53  ;;  %v794_v26 = vperm.slane %v2158_v33, %v1998_v1 }
 0x11c   :  { %v1260_v14 = vsel %vm1259_vm6, %v1258_v8, %v1256_v10  ;;  %v882_v8 = vperm.slane %v2174_v43, %v2002_v3 }
 0x11e   :  { %v1058_v37 = vld.sshfl [vmem:[#allocation1] sm:$0xff pattern:$0x73625140] }
 0x11f   :  { %1060 = vst [vmem:[#allocation1] ss:$4 sm:$0xff] %v746_v29  ;;  %v806_v29 = vperm.slane %v2158_v33, %v2004_v4 }
 0x120   :  { %1195 = vperm.xlu2 %1696, %v1058_v37   ;;  %1061 = vst [vmem:[#allocation1 + $0x1] ss:$4 sm:$0xff] %v750_v30  ;;  %v850_v37 = vperm.slane %v2180_v48, %v2002_v3  ;;  %v838_v48 = vperm.slane %v2154_v31, %v2004_v4 }
 0x121   :  { %1062 = vst [vmem:[#allocation1 + $0x2] ss:$4 sm:$0xff] %v754_v35  ;;  %v2313_v35 = vadd.s32 4294967216, %v2183_v49 }
 0x122   :  { %v1049_v51 = vld.sshfl [vmem:[#allocation1 + $0x20] sm:$0xff pattern:$0x73625140]  ;;  %1063 = vst [vmem:[#allocation1 + $0x3] ss:$4 sm:$0xff] %v758_v36  ;;  %v2316_v36 = vadd.s32 4294967224, %v2183_v49 }
 0x123   :  { %1054 = vst [vmem:[#allocation1 + $0x20] ss:$4 sm:$0xff] %v730_v41  ;;  %1192 = vperm.xlu0 %1697, %v1049_v51   ;;  %v1136_v16 = vpop.permute.xlu1 %1135 }
 0x124   :  { %1055 = vst [vmem:[#allocation1 + $0x21] ss:$4 sm:$0xff] %v734_v46  ;;  %v1262_v17 = vperm.slane %v1136_v16, %v2288_v15  ;;  %v2359_v16 = vadd.s32 4294967184, %v2183_v49 }
 0x125   :  { %1056 = vst [vmem:[#allocation1 + $0x22] ss:$4 sm:$0xff] %v738_v23  ;;  %v830_v23 = vperm.slane %v2154_v31, %v2000_v2 }
 0x126   :  { %1057 = vst [vmem:[#allocation1 + $0x23] ss:$4 sm:$0xff] %v742_v50  ;;  %v1264_v22 = vsel %vm1263_vm7, %v1262_v17, %v1260_v14  ;;  %v1270_v50 = vperm.slane %v1142_v38, %v2313_v35  ;;  %v858_v17 = vperm.slane %v2176_v45, %v1998_v1 }
 0x129   :  { %v1068_v63 = vld.sshfl [vmem:[#allocation1] sm:$0xff pattern:$0x73625140] }
 0x12a   :  { %1070 = vst [vmem:[#allocation1] ss:$4 sm:$0xff] %v778_v54 }
 0x12b   :  { %1201 = vperm.xlu0 %1697, %v1068_v63   ;;  %1071 = vst [vmem:[#allocation1 + $0x1] ss:$4 sm:$0xff] %v782_v56  ;;  %v2337_v56 = vadd.s32 4294967192, %v2183_v49  ;;  %v874_v63 = vperm.slane %v2174_v43, %v1998_v1 }
 0x12c   :  { %1072 = vst [vmem:[#allocation1 + $0x2] ss:$4 sm:$0xff] %v786_v61 }
 0x12d   :  { %v1059_v13 = vld.sshfl [vmem:[#allocation1 + $0x20] sm:$0xff pattern:$0x73625140]  ;;  %1073 = vst [vmem:[#allocation1 + $0x3] ss:$4 sm:$0xff] %v790_v62 }
 0x12e   :  { %1198 = vperm.xlu1 %1695, %v1059_v13   ;;  %1064 = vst [vmem:[#allocation1 + $0x20] ss:$4 sm:$0xff] %v762_v6 }
 0x12f   :  { %1065 = vst [vmem:[#allocation1 + $0x21] ss:$4 sm:$0xff] %v766_v7  ;;  %v878_v7 = vperm.slane %v2174_v43, %v2000_v2 }
 0x130   :  { %1066 = vst [vmem:[#allocation1 + $0x22] ss:$4 sm:$0xff] %v770_v11  ;;  %v1151_v31 = vpop.permute.xlu2 %1150 }
 0x131   :  { %1067 = vst [vmem:[#allocation1 + $0x23] ss:$4 sm:$0xff] %v774_v18  ;;  %v1282_v10 = vperm.slane %v1151_v31, %v2337_v56  ;;  %v886_v18 = vperm.slane %v2174_v43, %v2004_v4  ;;  %v866_v43 = vperm.slane %v2176_v45, %v2002_v3  ;;  %v1737_v31 = vmov 0.0  }
 0x132   :  { %v1139_v33 = vpop.permute.xlu0 %1138 }
 0x133   :  { %v1266_v46 = vperm.slane %v1139_v33, %v2316_v36  ;;  %v898_v33 = vperm.slane %v2198_v59, %v2002_v3 }
 0x134   :  { %v1078_v25 = vld.sshfl [vmem:[#allocation1] sm:$0xff pattern:$0x73625140] }
 0x135   :  { %1080 = vst [vmem:[#allocation1] ss:$4 sm:$0xff] %v810_v20  ;;  %v1268_v51 = vsel %vm1267_vm8, %v1266_v46, %v1264_v22 }
 0x136   :  { %1207 = vperm.xlu1 %1695, %v1078_v25   ;;  %1081 = vst [vmem:[#allocation1 + $0x1] ss:$4 sm:$0xff] %v814_v21  ;;  %v1272_v54 = vsel %vm1271_vm9, %v1270_v50, %v1268_v51  ;;  %v862_v21 = vperm.slane %v2176_v45, %v2000_v2 }
 0x137   :  { %1082 = vst [vmem:[#allocation1 + $0x2] ss:$4 sm:$0xff] %v818_v24  ;;  %v870_v24 = vperm.slane %v2176_v45, %v2004_v4  ;;  %v890_v45 = vperm.slane %v2198_v59, %v1998_v1 }
 0x138   :  { %v1069_v30 = vld.sshfl [vmem:[#allocation1 + $0x20] sm:$0xff pattern:$0x73625140]  ;;  %1083 = vst [vmem:[#allocation1 + $0x3] ss:$4 sm:$0xff] %v822_v9 }
 0x139   :  { %1204 = vperm.xlu2 %1696, %v1069_v30   ;;  %1074 = vst [vmem:[#allocation1 + $0x20] ss:$4 sm:$0xff] %v794_v26 }
 0x13a   :  { %1075 = vst [vmem:[#allocation1 + $0x21] ss:$4 sm:$0xff] %v798_v27  ;;  %v1148_v62 = vpop.permute.xlu0 %1147  ;;  %v2373_v27 = vadd.s32 4294967176, %v2183_v49 }
 0x13b   :  { %1076 = vst [vmem:[#allocation1 + $0x22] ss:$4 sm:$0xff] %v802_v28  ;;  %v1278_v6 = vperm.slane %v1148_v62, %v2343_v52  ;;  %v1366_v62 = vld [vmem:[%s2805_s1 + $0x68] sm:$0xff] }
 0x13c   :  { %1077 = vst [vmem:[#allocation1 + $0x23] ss:$4 sm:$0xff] %v806_v29 }
 0x13d   :  { %v1145_v61 = vpop.permute.xlu1 %1144 }
 0x13e   :  { %v1274_v0 = vperm.slane %v1145_v61, %v2340_v60 }
 0x13f   :  { %v2322_v41 = vld.sshfl [vmem:[#allocation1] sm:$0xff pattern:$0x73625140] }
 0x140   :  { %1090 = vst [vmem:[#allocation1] ss:$4 sm:$0xff] %v842_v32  ;;  %v1276_v11 = vsel %vm1275_vm10, %v1274_v0, %v1272_v54  ;;  %v1365_v0 = vld [vmem:[%s2805_s1 + $0x60] sm:$0xff] }
 0x141   :  { %1091 = vst [vmem:[#allocation1 + $0x1] ss:$4 sm:$0xff] %v846_v12  ;;  %v1280_v14 = vsel %vm1279_vm11, %v1278_v6, %v1276_v11  ;;  %v894_v12 = vperm.slane %v2198_v59, %v2000_v2  ;;  %v2392_v2 = vpop.permute.xlu2 %1159  ;;  %v1364_v11 = vld [vmem:[%s2805_s1 + $0x58] sm:$0xff] }
 0x142   :  { %1092 = vst [vmem:[#allocation1 + $0x2] ss:$4 sm:$0xff] %v850_v37  ;;  %v1284_v20 = vsel %vm1283_vm12, %v1282_v10, %v1280_v14  ;;  %v902_v37 = vperm.slane %v2198_v59, %v2004_v4 }
 0x143   :  { %v1079_v53 = vld.sshfl [vmem:[#allocation1 + $0x20] sm:$0xff pattern:$0x73625140]  ;;  %1093 = vst [vmem:[#allocation1 + $0x3] ss:$4 sm:$0xff] %v854_v40  ;;  %v2389_v40 = vshrl.u32 %v1230_v44, 7 }
 0x144   :  { %1210 = vperm.xlu0 %1697, %v1079_v53   ;;  %1084 = vst [vmem:[#allocation1 + $0x20] ss:$4 sm:$0xff] %v826_v47  ;;  %v1368_v44 = vld [vmem:[%s2805_s1 + $0x78] sm:$0xff]  ;;  %v1367_v53 = vld [vmem:[%s2805_s1 + $0x70] sm:$0xff] }
 0x145   :  { %1085 = vst [vmem:[#allocation1 + $0x21] ss:$4 sm:$0xff] %v830_v23  ;;  %v1154_v22 = vpop.permute.xlu1 %1153  ;;  %1385 = vmatpush.msra.mxu0 %v1368_v44 }
 0x146   :  { %1086 = vst [vmem:[#allocation1 + $0x22] ss:$4 sm:$0xff] %v834_v39  ;;  %v1286_v25 = vperm.slane %v1154_v22, %v2359_v16 }
 0x147   :  { %1087 = vst [vmem:[#allocation1 + $0x23] ss:$4 sm:$0xff] %v838_v48  ;;  %1386 = vmatpush.msra.mxu0 %v1367_v53 }
 0x148   :  { %v1288_v26 = vsel %vm2808_vm13, %v1286_v25, %v1284_v20 }
 0x149   :  { %1387 = vmatpush.msra.mxu0 %v1366_v62  ;;  %v1355_v62 = vld [vmem:[%s2805_s1 + $0x10] sm:$0xff] }
 0x14a   :  { %v1098_v13 = vld.sshfl [vmem:[#allocation1] sm:$0xff pattern:$0x73625140] }
 0x14b   :  { %1100 = vst [vmem:[#allocation1] ss:$4 sm:$0xff] %v874_v63  ;;  %1388 = vmatpush.msra.mxu0 %v1365_v0 }
 0x14c   :  { %1219 = vperm.xlu0 %1697, %v1098_v13   ;;  %1101 = vst [vmem:[#allocation1 + $0x1] ss:$4 sm:$0xff] %v878_v7 }
 0x14d   :  { %1102 = vst [vmem:[#allocation1 + $0x2] ss:$4 sm:$0xff] %v882_v8  ;;  %1389 = vmatpush.msra.mxu0 %v1364_v11 }
 0x14e   :  { %1103 = vst [vmem:[#allocation1 + $0x3] ss:$4 sm:$0xff] %v886_v18  ;;  %v1089_v9 = vld.sshfl [vmem:[#allocation1 + $0x20] sm:$0xff pattern:$0x73625140] }
 0x14f   :  { %1094 = vst [vmem:[#allocation1 + $0x20] ss:$4 sm:$0xff] %v858_v17  ;;  %v1363_v17 = vld [vmem:[%s2805_s1 + $0x50] sm:$0xff] }
 0x150   :  { %1095 = vst [vmem:[#allocation1 + $0x21] ss:$4 sm:$0xff] %v862_v21  ;;  %1390 = vmatpush.msra.mxu0 %v1363_v17  ;;  %v1362_v21 = vld [vmem:[%s2805_s1 + $0x48] sm:$0xff] }
 0x151   :  { %1096 = vst [vmem:[#allocation1 + $0x22] ss:$4 sm:$0xff] %v866_v43  ;;  %v2398_v59 = vpop.permute.xlu2 %1168 }
 0x152   :  { %1097 = vst [vmem:[#allocation1 + $0x23] ss:$4 sm:$0xff] %v870_v24  ;;  %1391 = vmatpush.msra.mxu0 %v1362_v21 }
 0x153   :  { %v1157_v28 = vpop.permute.xlu0 %1156 }
 0x154   :  { %1216 = vperm.xlu0 %1697, %v1089_v9   ;;  %v1290_v29 = vperm.slane %v1157_v28, %v2373_v27  ;;  %v1361_v9 = vld [vmem:[%s2805_s1 + $0x40] sm:$0xff]  ;;  %v1360_v28 = vld [vmem:[%s2805_s1 + $0x38] sm:$0xff] }
 0x155   :  { %v1108_v30 = vld.sshfl [vmem:[#allocation1] sm:$0xff pattern:$0x73625140]  ;;  %1392 = vmatpush.msra.mxu0 %v1361_v9 }
 0x156   :  { %1225 = vperm.xlu1 %1695, %v1108_v30   ;;  %v2379_v32 = vsel %vm2807_vm14, %v1290_v29, %v1288_v26  ;;  %vm19_vm14 = vcmask 257026  }
 0x157   :  { %vm2409_vm13 = vmor %vm19_vm14, %vm18_vm15  ;;  %1393 = vmatpush.msra.mxu0 %v1360_v28 }
 0x158   :  { %21 = vst.msk [vmem:[#allocation2] sm:$0xf] %vm2409_vm13, %v1737_v31 }
 0x159   :  { %v1099_v38 = vld.sshfl [vmem:[#allocation1 + $0x20] sm:$0xff pattern:$0x73625140]  ;;  %v1178_v23 = vpop.permute.xlu2 %1177 }
 0x15a   :  { %1222 = vperm.xlu2 %1696, %v1099_v38   ;;  %1104 = vst [vmem:[#allocation1 + $0x20] ss:$4 sm:$0xff] %v890_v45  ;;  %v1303_v20 = vperm.slane %v1178_v23, %v2214_v58 }
 0x15b   :  { %1105 = vst [vmem:[#allocation1 + $0x21] ss:$4 sm:$0xff] %v894_v12  ;;  %v2394_v3 = vpop.permute.xlu0 %1165 }
 0x15c   :  { %1106 = vst [vmem:[#allocation1 + $0x22] ss:$4 sm:$0xff] %v898_v33  ;;  %v1358_v33 = vld [vmem:[%s2805_s1 + $0x28] sm:$0xff] }
 0x15d   :  { %1107 = vst [vmem:[#allocation1 + $0x23] ss:$4 sm:$0xff] %v902_v37  ;;  %v1372_v37 = vld [vmem:[%s2805_s1 + $0x98] sm:$0xff] }
 0x15e   :  { %1213 = vperm.xlu1 %1695, %v2322_v41   ;;  %v2396_v4 = vpop.permute.xlu1 %1162  ;;  %1417 = vmatpush.msra.mxu1 %v1372_v37 }
 0x164   :  { %v1109_v1 = vld.sshfl [vmem:[#allocation1 + $0x20] sm:$0xff pattern:$0x73625140] }
 0x165   :  { %1228 = vperm.xlu2 %1696, %v1109_v1  }
 0x166   :  { %v1172_v47 = vpop.permute.xlu1 %1171 }
 0x167   :  { %v1300_v10 = vperm.slane %v1172_v47, %v2183_v49  ;;  %v1294_v47 = vperm.slane %v2396_v4, %v2194_v55  ;;  %v1293_v4 = vperm.slane %v2392_v2, %v2183_v49 }
 0x16d   :  { %1698 = vset.pattern.permute.xlu2 %v2389_v40 }
 0x172   :  { %v1187_v51 = vpop.permute.xlu2 %1186 }
 0x173   :  { %v1309_v45 = vperm.slane %v1187_v51, %v2250_v42  ;;  %v1357_v42 = vld [vmem:[%s2805_s1 + $0x20] sm:$0xff]  ;;  %v1356_v51 = vld [vmem:[%s2805_s1 + $0x18] sm:$0xff] }
 0x174   :  { %v1175_v46 = vpop.permute.xlu0 %1174 }
 0x175   :  { %v1301_v6 = vperm.slane %v1175_v46, %v2194_v55 }
 0x177   :  { %v1302_v13 = vsel %vm1235_vm0, %v1301_v6, %v1300_v10 }
 0x178   :  { %v1304_v43 = vsel %vm1239_vm1, %v1303_v20, %v1302_v13 }
 0x17a   :  { %v2406_v54 = vpop.permute.xlu2 %1195 }
 0x17c   :  { %v1184_v50 = vpop.permute.xlu0 %1183 }
 0x17d   :  { %v1307_v22 = vperm.slane %v1184_v50, %v2240_v34  ;;  %v1359_v34 = vld [vmem:[%s2805_s1 + $0x30] sm:$0xff] }
 0x17e   :  { %1394 = vmatpush.msra.mxu0 %v1359_v34  ;;  %v1435_v34 = vadd.s32 8, %v2389_v40 }
 0x17f   :  { %v1181_v41 = vpop.permute.xlu1 %1180 }
 0x180   :  { %v1305_v14 = vperm.slane %v1181_v41, %v2224_v19  ;;  %1395 = vmatpush.msra.mxu0 %v1358_v33  ;;  %1699 = vset.pattern.permute.xlu1 %v1435_v34 }
 0x182   :  { %v1306_v24 = vsel %vm1243_vm2, %v1305_v14, %v1304_v43  ;;  %1396 = vmatpush.msra.mxu0 %v1357_v42  ;;  %v1447_v42 = vadd.s32 24, %v2389_v40 }
 0x183   :  { %v1308_v29 = vsel %vm1247_vm3, %v1307_v22, %v1306_v24  ;;  %v22_v24 = vld [vmem:[#allocation2] sm:$0xf]  ;;  %vm2812_vm3 = vcmask 1048512  }
 0x184   :  { %v1310_v1 = vsel %vm1251_vm4, %v1309_v45, %v1308_v29  ;;  %1397 = vmatpush.msra.mxu0 %v1356_v51  ;;  %v1495_v51 = vadd.s32 88, %v2389_v40 }
 0x186   :  { %1398 = vmatpush.msra.mxu0 %v1355_v62 }
 0x187   :  { %v1190_v48 = vpop.permute.xlu1 %1189 }
 0x188   :  { %v1311_v30 = vperm.slane %v1190_v48, %v2269_v57  ;;  %v1371_v57 = vld [vmem:[%s2805_s1 + $0x90] sm:$0xff]  ;;  %v1315_v48 = vperm.slane %v2406_v54, %v2288_v15 }
 0x189   :  { %1418 = vmatpush.msra.mxu1 %v1371_v57  ;;  %v2546_v57 = vadd.s32 56, %v2389_v40 }
 0x18a   :  { %v1312_v46 = vsel %vm1255_vm5, %v1311_v30, %v1310_v1  ;;  %v2538_v30 = vadd.s32 16, %v2389_v40  ;;  %v2549_v1 = vadd.s32 32, %v2389_v40 }
 0x18c   :  { %1700 = vset.pattern.permute.xlu0 %v2538_v30 }
 0x193   :  { %v2424_v8 = vpop.permute.xlu2 %1204 }
 0x194   :  { %v1321_v13 = vperm.slane %v2424_v8, %v2340_v60 }
 0x195   :  { %v1193_v39 = vpop.permute.xlu0 %1192 }
 0x196   :  { %v1313_v12 = vperm.slane %v1193_v39, %v2266_v5  ;;  %v1370_v5 = vld [vmem:[%s2805_s1 + $0x88] sm:$0xff]  ;;  %v1369_v39 = vld [vmem:[%s2805_s1 + $0x80] sm:$0xff] }
 0x197   :  { %1419 = vmatpush.msra.mxu1 %v1370_v5  ;;  %v2555_v5 = vadd.s32 96, %v2389_v40 }
 0x198   :  { %v1314_v23 = vsel %vm1259_vm6, %v1313_v12, %v1312_v46  ;;  %v1465_v46 = vadd.s32 48, %v2389_v40 }
 0x199   :  { %v1316_v31 = vsel %vm1263_vm7, %v1315_v48, %v1314_v23  ;;  %1420 = vmatpush.msra.mxu1 %v1369_v39  ;;  %v2561_v23 = vadd.s32 72, %v2389_v40  ;;  %v2570_v39 = vadd.s32 80, %v2389_v40  ;;  %v2575_v48 = vadd.s32 112, %v2389_v40 }
 0x19d   :  { %v2418_v63 = vpop.permute.xlu0 %1201 }
 0x19e   :  { %v1319_v15 = vperm.slane %v2418_v63, %v2313_v35  ;;  %v1298_v63 = vperm.slane %v2398_v59, %v2224_v19 }
 0x1a0   :  { %v1199_v7 = vpop.permute.xlu1 %1198 }
 0x1a1   :  { %v1317_v50 = vperm.slane %v1199_v7, %v2316_v36  ;;  %v1296_v36 = vperm.slane %v2394_v3, %v2214_v58  ;;  %v1354_v3 = vld [vmem:[%s2805_s1 + $0x8] sm:$0xff] }
 0x1a2   :  { %1399 = vmatpush.msra.mxu0 %v1354_v3 }
 0x1a3   :  { %v1318_v2 = vsel %vm1267_vm8, %v1317_v50, %v1316_v31  ;;  %v1477_v50 = vadd.s32 64, %v2389_v40 }
 0x1a4   :  { %v1320_v10 = vsel %vm1271_vm9, %v1319_v15, %v1318_v2 }
 0x1a5   :  { %v1322_v59 = vsel %vm1275_vm10, %v1321_v13, %v1320_v10 }
 0x1a8   :  { %v2447_v26 = vpop.permute.xlu1 %1207 }
 0x1a9   :  { %v1323_v11 = vperm.slane %v2447_v26, %v2343_v52 }
 0x1ab   :  { %v1324_v43 = vsel %vm1279_vm11, %v1323_v11, %v1322_v59 }
 0x1b4   :  { %v1223_v25 = vpop.permute.xlu2 %1222 }
 0x1b5   :  { %v1332_v44 = vperm.slane %v1223_v25, %v2194_v55 }
 0x1b6   :  { %v2430_v18 = vpop.permute.xlu0 %1210 }
 0x1b7   :  { %v1325_v14 = vperm.slane %v2430_v18, %v2337_v56 }
 0x1b9   :  { %v1326_v60 = vsel %vm1283_vm12, %v1325_v14, %v1324_v43 }
 0x1be   :  { %v1220_v38 = vpop.permute.xlu0 %1219 }
 0x1bf   :  { %v1331_v41 = vperm.slane %v1220_v38, %v2183_v49  ;;  %v1229_v54 = vpop.permute.xlu2 %1228  ;;  %v1295_v49 = vsel %vm1235_vm0, %v1294_v47, %v1293_v4  ;;  %v1459_v47 = vadd.s32 40, %v2389_v40  ;;  %v2578_v4 = vadd.s32 104, %v2389_v40 }
 0x1c0   :  { %v1336_v35 = vperm.slane %v1229_v54, %v2224_v19  ;;  %v1297_v7 = vsel %vm1239_vm1, %v1296_v36, %v1295_v49  ;;  %v2584_v36 = vadd.s32 120, %v2389_v40 }
 0x1c1   :  { %v1333_v55 = vsel %vm1235_vm0, %v1332_v44, %v1331_v41  ;;  %vm1338_vm0 = vcmask 1041409   ;;  %v1299_v19 = vsel %vm1243_vm2, %v1298_v63, %v1297_v7 }
 0x1c6   :  { %v1217_v20 = vpop.permute.xlu0 %1216 }
 0x1c7   :  { %v1329_v56 = vperm.slane %v1217_v20, %v2373_v27 }
 0x1c8   :  { %v1226_v53 = vpop.permute.xlu1 %1225 }
 0x1c9   :  { %v1334_v0 = vperm.slane %v1226_v53, %v2214_v58  ;;  %v1353_v58 = vld [vmem:[%s2805_s1] sm:$0xff] }
 0x1ca   :  { %1400 = vmatpush.msra.mxu0 %v1353_v58 }
 0x1cb   :  { %v1335_v6 = vsel %vm1239_vm1, %v1334_v0, %v1333_v55  ;;  %vm2811_vm1 = vcmask 982912  }
 0x1cc   :  { %v1337_v17 = vsel %vm1243_vm2, %v1336_v35, %v1335_v6  ;;  %vm1382_vm2 = vcmask 261120  }
 0x1cd   :  { %v1340_v52 = vsel %vm1338_vm0, %v1337_v17, %v1299_v19 }
 0x1ce   :  { %v1341_v18 = vrot.slane %v1340_v52, 6 }
 0x1d0   :  { %v1214_v21 = vpop.permute.xlu1 %1213 }
 0x1d1   :  { %v1327_v22 = vperm.slane %v1214_v21, %v2359_v16 }
 0x1d3   :  { %v1328_v8 = vsel %vm2811_vm1, %v1327_v22, %v1326_v60 }
 0x1d4   :  { %v1330_v9 = vsel %vm2812_vm3, %v1329_v56, %v1328_v8 }
 0x1d5   :  { %v1339_v25 = vsel %vm1338_vm0, %v1330_v9, %v2379_v32  ;;  %v1731_v32 = vld [vmem:[%s2804_s2] ss:$0 sm:$0xff] }
 0x1d6   :  { %v1343_v26 = vsel %vm18_vm15, %v1339_v25, %v1341_v18 }
 0x1d7   :  { %v1345_v28 = vadd.f32 %v1343_v26, %v22_v24 }
 0x1d9   :  { %1348 = vst.msk [vmem:[#allocation2] sm:$0xf] %vm2409_vm13, %v1345_v28 }
 0x1e0   :  { %v1352_v16 = vld [vmem:[#allocation2] sm:$0xf] }
 0x1e1   :  { %1378 = vst [vmem:[#allocation1] ss:$4 sm:$0xff] %v1352_v16 }
 0x1e8   :  { %v1379_v29 = vld.sshfl [vmem:[#allocation1] sm:$0xff pattern:$0x73625140]  ;;  %v1380_v27 = vld.sshfl [vmem:[#allocation1 + $0x8] sm:$0xff pattern:$0x73625140] }
 0x1e9   :  { %1401 = vmatmul.f32.vlgmr.msra.gmra.mxu0 %v1379_v29  ;;  %1688 = vmatmul.msk.f32.vlgmr.msra.gmra.mxu1 %vm1382_vm2, %v1380_v27 }
 0x266   :  { %v1402_v61 = vpop.f32.mrf.mxu0  ;;  %v1422_v12 = vpop.f32.mrf.mxu1 }
 0x267   :  { %v1403_v45 = vadd.f32 %v1731_v32, %v1402_v61 }
 0x269   :  { %v1423_v33 = vadd.f32 %v1422_v12, %v1403_v45 }
 0x26b   :  { %v1425_v37 = vmax.f32 %v1423_v33, 0.0 }
 0x26d   :  { %v1426_v38 = vperm.slane %v1425_v37, 0  ;;  %v2565_v41 = vperm.slane %v1425_v37, 1 }
 0x26f   :  { %1443 = vperm.xlu0 %1700, %v1426_v38   ;;  %1437 = vperm.xlu1 %1699, %v1426_v38  }
 0x270   :  { %1431 = vperm.xlu2 %1698, %v1426_v38  }
 0x277   :  { %1705 = vset.pattern.permute.xlu0 %v2546_v57  ;;  %1702 = vset.pattern.permute.xlu1 %v2549_v1 }
 0x278   :  { %1701 = vset.pattern.permute.xlu2 %v1447_v42 }
 0x27f   :  { %1473 = vperm.xlu0 %1705, %v1426_v38   ;;  %1455 = vperm.xlu1 %1702, %v1426_v38  }
 0x280   :  { %1449 = vperm.xlu2 %1701, %v1426_v38  }
 0x287   :  { %1710 = vset.pattern.permute.xlu0 %v2555_v5  ;;  %1704 = vset.pattern.permute.xlu1 %v1465_v46 }
 0x288   :  { %1703 = vset.pattern.permute.xlu2 %v1459_v47 }
 0x28f   :  { %1503 = vperm.xlu0 %1710, %v1426_v38   ;;  %1467 = vperm.xlu1 %1704, %v1426_v38  }
 0x290   :  { %1461 = vperm.xlu2 %1703, %v1426_v38  }
 0x297   :  { %1715 = vset.pattern.permute.xlu0 %v1435_v34  ;;  %1707 = vset.pattern.permute.xlu1 %v2561_v23 }
 0x298   :  { %1706 = vset.pattern.permute.xlu2 %v1477_v50 }
 0x29f   :  { %1534 = vperm.xlu0 %1715, %v2565_v41   ;;  %1485 = vperm.xlu1 %1707, %v1426_v38  }
 0x2a0   :  { %1479 = vperm.xlu2 %1706, %v1426_v38  }
 0x2a7   :  { %1720 = vset.pattern.permute.xlu0 %v1465_v46  ;;  %1709 = vset.pattern.permute.xlu1 %v1495_v51 }
 0x2a8   :  { %1708 = vset.pattern.permute.xlu2 %v2570_v39 }
 0x2af   :  { %1564 = vperm.xlu0 %1720, %v2565_v41   ;;  %1497 = vperm.xlu1 %1709, %v1426_v38  }
 0x2b0   :  { %1491 = vperm.xlu2 %1708, %v1426_v38  }
 0x2b7   :  { %1725 = vset.pattern.permute.xlu0 %v1495_v51  ;;  %1712 = vset.pattern.permute.xlu1 %v2575_v48 }
 0x2b8   :  { %1711 = vset.pattern.permute.xlu2 %v2578_v4 }
 0x2bf   :  { %1594 = vperm.xlu0 %1725, %v2565_v41   ;;  %1515 = vperm.xlu1 %1712, %v1426_v38  }
 0x2c0   :  { %1509 = vperm.xlu2 %1711, %v1426_v38  }
 0x2c7   :  { %1714 = vset.pattern.permute.xlu1 %v2389_v40  ;;  %1730 = vset.pattern.permute.xlu0 %v2584_v36 }
 0x2c8   :  { %1713 = vset.pattern.permute.xlu2 %v2584_v36 }
 0x2ca   :  { %v1432_v44 = vpop.permute.xlu2 %1431 }
 0x2cb   :  { %1620 = vst [vmem:[%s2806_s3] sm:$0xff] %v1432_v44 }
 0x2cc   :  { %1621 = vst [vmem:[%s2806_s3 + $0x8] sm:$0xff] %v1432_v44 }
 0x2cf   :  { %1528 = vperm.xlu1 %1714, %v2565_v41  }
 0x2d0   :  { %1521 = vperm.xlu2 %1713, %v1426_v38  }
 0x2d7   :  { %1717 = vset.pattern.permute.xlu1 %v1447_v42 }
 0x2d8   :  { %1716 = vset.pattern.permute.xlu2 %v2538_v30 }
 0x2da   :  { %v1450_v40 = vpop.permute.xlu2 %1449 }
 0x2db   :  { %1626 = vst [vmem:[%s2806_s3 + $0x30] sm:$0xff] %v1450_v40 }
 0x2dc   :  { %1627 = vst [vmem:[%s2806_s3 + $0x38] sm:$0xff] %v1450_v40 }
 0x2df   :  { %1546 = vperm.xlu1 %1717, %v2565_v41  }
 0x2e0   :  { %1540 = vperm.xlu2 %1716, %v2565_v41  }
 0x2e1   :  { %v1444_v53 = vpop.permute.xlu0 %1443  ;;  %v1438_v62 = vpop.permute.xlu1 %1437 }
 0x2e2   :  { %1624 = vst [vmem:[%s2806_s3 + $0x20] sm:$0xff] %v1444_v53 }
 0x2e3   :  { %1625 = vst [vmem:[%s2806_s3 + $0x28] sm:$0xff] %v1444_v53 }
 0x2e4   :  { %1622 = vst [vmem:[%s2806_s3 + $0x10] sm:$0xff] %v1438_v62 }
 0x2e5   :  { %1623 = vst [vmem:[%s2806_s3 + $0x18] sm:$0xff] %v1438_v62 }
 0x2e7   :  { %1719 = vset.pattern.permute.xlu1 %v1459_v47 }
 0x2e8   :  { %1718 = vset.pattern.permute.xlu2 %v2549_v1 }
 0x2ea   :  { %v1462_v31 = vpop.permute.xlu2 %1461 }
 0x2eb   :  { %1630 = vst [vmem:[%s2806_s3 + $0x50] sm:$0xff] %v1462_v31 }
 0x2ec   :  { %1631 = vst [vmem:[%s2806_s3 + $0x58] sm:$0xff] %v1462_v31 }
 0x2ef   :  { %1558 = vperm.xlu1 %1719, %v2565_v41  }
 0x2f0   :  { %1552 = vperm.xlu2 %1718, %v2565_v41  }
 0x2f1   :  { %v1474_v15 = vpop.permute.xlu0 %1473  ;;  %v1456_v54 = vpop.permute.xlu1 %1455 }
 0x2f2   :  { %1634 = vst [vmem:[%s2806_s3 + $0x70] sm:$0xff] %v1474_v15 }
 0x2f3   :  { %1635 = vst [vmem:[%s2806_s3 + $0x78] sm:$0xff] %v1474_v15 }
 0x2f4   :  { %1628 = vst [vmem:[%s2806_s3 + $0x40] sm:$0xff] %v1456_v54 }
 0x2f5   :  { %1629 = vst [vmem:[%s2806_s3 + $0x48] sm:$0xff] %v1456_v54 }
 0x2f7   :  { %1722 = vset.pattern.permute.xlu1 %v1477_v50 }
 0x2f8   :  { %1721 = vset.pattern.permute.xlu2 %v2546_v57 }
 0x2fa   :  { %v1480_v0 = vpop.permute.xlu2 %1479 }
 0x2fb   :  { %1636 = vst [vmem:[%s2806_s3 + $0x80] sm:$0xff] %v1480_v0 }
 0x2fc   :  { %1637 = vst [vmem:[%s2806_s3 + $0x88] sm:$0xff] %v1480_v0 }
 0x2ff   :  { %1576 = vperm.xlu1 %1722, %v2565_v41  }
 0x300   :  { %1570 = vperm.xlu2 %1721, %v2565_v41  }
 0x301   :  { %v1504_v49 = vpop.permute.xlu0 %1503  ;;  %v1468_v2 = vpop.permute.xlu1 %1467 }
 0x302   :  { %1644 = vst [vmem:[%s2806_s3 + $0xc0] sm:$0xff] %v1504_v49 }
 0x303   :  { %1645 = vst [vmem:[%s2806_s3 + $0xc8] sm:$0xff] %v1504_v49 }
 0x304   :  { %1632 = vst [vmem:[%s2806_s3 + $0x60] sm:$0xff] %v1468_v2 }
 0x305   :  { %1633 = vst [vmem:[%s2806_s3 + $0x68] sm:$0xff] %v1468_v2 }
 0x307   :  { %1724 = vset.pattern.permute.xlu1 %v2570_v39 }
 0x308   :  { %1723 = vset.pattern.permute.xlu2 %v2561_v23 }
 0x30a   :  { %v1492_v55 = vpop.permute.xlu2 %1491 }
 0x30b   :  { %1640 = vst [vmem:[%s2806_s3 + $0xa0] sm:$0xff] %v1492_v55 }
 0x30c   :  { %1641 = vst [vmem:[%s2806_s3 + $0xa8] sm:$0xff] %v1492_v55 }
 0x30f   :  { %1588 = vperm.xlu1 %1724, %v2565_v41  }
 0x310   :  { %1582 = vperm.xlu2 %1723, %v2565_v41  }
 0x311   :  { %v1535_v3 = vpop.permute.xlu0 %1534  ;;  %v1486_v6 = vpop.permute.xlu1 %1485 }
 0x312   :  { %1654 = vst [vmem:[%s2806_s3 + $0x110] sm:$0xff] %v1535_v3 }
 0x313   :  { %1655 = vst [vmem:[%s2806_s3 + $0x118] sm:$0xff] %v1535_v3 }
 0x314   :  { %1638 = vst [vmem:[%s2806_s3 + $0x90] sm:$0xff] %v1486_v6 }
 0x315   :  { %1639 = vst [vmem:[%s2806_s3 + $0x98] sm:$0xff] %v1486_v6 }
 0x317   :  { %1727 = vset.pattern.permute.xlu1 %v2578_v4 }
 0x318   :  { %1726 = vset.pattern.permute.xlu2 %v2555_v5 }
 0x31a   :  { %v1510_v35 = vpop.permute.xlu2 %1509 }
 0x31b   :  { %1646 = vst [vmem:[%s2806_s3 + $0xd0] sm:$0xff] %v1510_v35 }
 0x31c   :  { %1647 = vst [vmem:[%s2806_s3 + $0xd8] sm:$0xff] %v1510_v35 }
 0x31f   :  { %1606 = vperm.xlu1 %1727, %v2565_v41  }
 0x320   :  { %1600 = vperm.xlu2 %1726, %v2565_v41  }
 0x321   :  { %v1565_v58 = vpop.permute.xlu0 %1564  ;;  %v1498_v63 = vpop.permute.xlu1 %1497 }
 0x322   :  { %1664 = vst [vmem:[%s2806_s3 + $0x160] sm:$0xff] %v1565_v58 }
 0x323   :  { %1665 = vst [vmem:[%s2806_s3 + $0x168] sm:$0xff] %v1565_v58 }
 0x324   :  { %1642 = vst [vmem:[%s2806_s3 + $0xb0] sm:$0xff] %v1498_v63 }
 0x325   :  { %1643 = vst [vmem:[%s2806_s3 + $0xb8] sm:$0xff] %v1498_v63 }
 0x327   :  { %1729 = vset.pattern.permute.xlu1 %v2584_v36 }
 0x328   :  { %1728 = vset.pattern.permute.xlu2 %v2575_v48 }
 0x32a   :  { %v1522_v7 = vpop.permute.xlu2 %1521 }
 0x32b   :  { %1650 = vst [vmem:[%s2806_s3 + $0xf0] sm:$0xff] %v1522_v7 }
 0x32c   :  { %1651 = vst [vmem:[%s2806_s3 + $0xf8] sm:$0xff] %v1522_v7 }
 0x32f   :  { %1618 = vperm.xlu1 %1729, %v2565_v41  }
 0x330   :  { %1612 = vperm.xlu2 %1728, %v2565_v41  }
 0x331   :  { %v1595_v10 = vpop.permute.xlu0 %1594  ;;  %v1516_v11 = vpop.permute.xlu1 %1515 }
 0x332   :  { %1674 = vst [vmem:[%s2806_s3 + $0x1b0] sm:$0xff] %v1595_v10 }
 0x333   :  { %1675 = vst [vmem:[%s2806_s3 + $0x1b8] sm:$0xff] %v1595_v10 }
 0x334   :  { %1648 = vst [vmem:[%s2806_s3 + $0xe0] sm:$0xff] %v1516_v11 }
 0x335   :  { %1649 = vst [vmem:[%s2806_s3 + $0xe8] sm:$0xff] %v1516_v11 }
 0x33a   :  { %v1541_v13 = vpop.permute.xlu2 %1540 }
 0x33b   :  { %1656 = vst [vmem:[%s2806_s3 + $0x120] sm:$0xff] %v1541_v13 }
 0x33c   :  { %1657 = vst [vmem:[%s2806_s3 + $0x128] sm:$0xff] %v1541_v13 }
 0x341   :  { %v1529_v14 = vpop.permute.xlu1 %1528 }
 0x342   :  { %1652 = vst [vmem:[%s2806_s3 + $0x100] sm:$0xff] %v1529_v14 }
 0x343   :  { %1653 = vst [vmem:[%s2806_s3 + $0x108] sm:$0xff] %v1529_v14 }
 0x34a   :  { %v1553_v17 = vpop.permute.xlu2 %1552 }
 0x34b   :  { %1660 = vst [vmem:[%s2806_s3 + $0x140] sm:$0xff] %v1553_v17 }
 0x34c   :  { %1661 = vst [vmem:[%s2806_s3 + $0x148] sm:$0xff] %v1553_v17 }
 0x351   :  { %v1547_v20 = vpop.permute.xlu1 %1546 }
 0x352   :  { %1658 = vst [vmem:[%s2806_s3 + $0x130] sm:$0xff] %v1547_v20 }
 0x353   :  { %1659 = vst [vmem:[%s2806_s3 + $0x138] sm:$0xff] %v1547_v20 }
 0x35a   :  { %v1571_v19 = vpop.permute.xlu2 %1570 }
 0x35b   :  { %1666 = vst [vmem:[%s2806_s3 + $0x170] sm:$0xff] %v1571_v19 }
 0x35c   :  { %1667 = vst [vmem:[%s2806_s3 + $0x178] sm:$0xff] %v1571_v19 }
 0x361   :  { %v1559_v59 = vpop.permute.xlu1 %1558 }
 0x362   :  { %1662 = vst [vmem:[%s2806_s3 + $0x150] sm:$0xff] %v1559_v59 }
 0x363   :  { %1663 = vst [vmem:[%s2806_s3 + $0x158] sm:$0xff] %v1559_v59 }
 0x36a   :  { %v1583_v21 = vpop.permute.xlu2 %1582 }
 0x36b   :  { %1670 = vst [vmem:[%s2806_s3 + $0x190] sm:$0xff] %v1583_v21 }
 0x36c   :  { %1671 = vst [vmem:[%s2806_s3 + $0x198] sm:$0xff] %v1583_v21 }
 0x371   :  { %v1577_v43 = vpop.permute.xlu1 %1576 }
 0x372   :  { %1668 = vst [vmem:[%s2806_s3 + $0x180] sm:$0xff] %v1577_v43 }
 0x373   :  { %1669 = vst [vmem:[%s2806_s3 + $0x188] sm:$0xff] %v1577_v43 }
 0x37a   :  { %v1601_v52 = vpop.permute.xlu2 %1600 }
 0x37b   :  { %1676 = vst [vmem:[%s2806_s3 + $0x1c0] sm:$0xff] %v1601_v52 }
 0x37c   :  { %1677 = vst [vmem:[%s2806_s3 + $0x1c8] sm:$0xff] %v1601_v52 }
 0x381   :  { %v1589_v22 = vpop.permute.xlu1 %1588 }
 0x382   :  { %1672 = vst [vmem:[%s2806_s3 + $0x1a0] sm:$0xff] %v1589_v22 }
 0x383   :  { %1673 = vst [vmem:[%s2806_s3 + $0x1a8] sm:$0xff] %v1589_v22 }
 0x38a   :  { %v1613_v60 = vpop.permute.xlu2 %1612 }
 0x38b   :  { %1680 = vst [vmem:[%s2806_s3 + $0x1e0] sm:$0xff] %v1613_v60 }
 0x38c   :  { %1681 = vst [vmem:[%s2806_s3 + $0x1e8] sm:$0xff] %v1613_v60 }
 0x391   :  { %v1607_v56 = vpop.permute.xlu1 %1606 }
 0x392   :  { %1678 = vst [vmem:[%s2806_s3 + $0x1d0] sm:$0xff] %v1607_v56 }
 0x393   :  { %1679 = vst [vmem:[%s2806_s3 + $0x1d8] sm:$0xff] %v1607_v56 }
 0x3a1   :  { %v1619_v8 = vpop.permute.xlu1 %1618 }
 0x3a2   :  { %1682 = vst [vmem:[%s2806_s3 + $0x1f0] sm:$0xff] %v1619_v8 }
 0x3a3   :  { %1683 = vst [vmem:[%s2806_s3 + $0x1f8] sm:$0xff] %v1619_v8 }

</bundles_post_ra>
